<compile_context>
chip_gen: v7x
topology: tpu7x:2x2x1
jax: 0.10.0
libtpu: 0.0.40
codegen_flags: <defaults>
</compile_context>

<pallas_src>
import functools
import math

import jax
import jax.numpy as jnp
from jax.experimental import pallas as pl
from jax.experimental.pallas import tpu as pltpu


# ---------------------------------------------------------------------------
# Fused Pallas kernel: the whole Generator conv stack in one gridless call
# ---------------------------------------------------------------------------

def _generator_fused_kernel(
    # activations / per-row features
    x_ref,       # (BT, aud)   f32   audio input, batch folded into rows (row = b*T + t)
    extra_ref,   # (BT, emb)   f32   time-constant [pre_pose|template] bias for decoder[0]
    nf_ref,      # (BT, 1)     f32   keep mask: 0.0 where t==0  (zeroes conv pad + batch wrap)
    nl_ref,      # (BT, 1)     f32   keep mask: 0.0 where t==T-1
    # audio encoder, taps pre-flattened to (3*Cin, Cout); BN folded; bias (1, Cout)
    we0_ref, be0_ref,
    we1_ref, be1_ref,
    we2_ref, be2_ref,
    # decoder (wd0 = audio-channel slice only; pre/template part lives in `extra`)
    wd0_ref, bd0_ref,
    wd1_ref, bd1_ref,
    wd2_ref, bd2_ref,
    wd3_ref, bd3_ref,
    # final 1x1 conv
    wf_ref, bf_ref,
    # output
    o_ref,       # (BT, pose)  f32
    *, bt, compute_dtype):
    f32 = jnp.float32
    cdt = compute_dtype

    nf = nf_ref[...]   # (BT, 1), broadcasts over channels
    nl = nl_ref[...]

    def conv3(h, w_ref, b_ref, extra=None):
        """Conv1d(k=3, s=1, pad=1) + folded-BN bias + ReLU, batch folded into rows.

        h[t-1] / h[t+1] are sublane rolls (XLU slot, off the MXU critical path);
        the nf/nl masks zero both the conv's zero padding and the cross-batch wrap
        rows exactly.  The three taps are lane-concatenated (K = 3*Cin <= 96) and
        hit the MXU as a single dot against the prepacked (3*Cin, Cout) weight.
        """
        left = pltpu.roll(h, shift=1, axis=0) * nf          # row t <- row t-1
        right = pltpu.roll(h, shift=bt - 1, axis=0) * nl    # row t <- row t+1 (+(BT-1) == -1)
        taps = jnp.concatenate([left, h, right], axis=-1)   # (BT, 3*Cin), one lane tile
        y = jnp.dot(taps.astype(cdt), w_ref[...], preferred_element_type=f32)
        y = y + b_ref[...]
        if extra is not None:
            y = y + extra
        return jnp.maximum(y, 0.0)                           # activations stay f32

    # ---- audio encoder ----------------------------------------------------
    h = conv3(x_ref[...], we0_ref, be0_ref)
    h = conv3(h, we1_ref, be1_ref)
    h = conv3(h, we2_ref, be2_ref)

    # ---- decoder (layer 0 gets the time-constant pre/template bias) -------
    h = conv3(h, wd0_ref, bd0_ref, extra=extra_ref[...])
    h = conv3(h, wd1_ref, bd1_ref)
    h = conv3(h, wd2_ref, bd2_ref)
    h = conv3(h, wd3_ref, bd3_ref)

    # ---- final 1x1 conv -----------------------------------------------------
    out = jnp.dot(h.astype(cdt), wf_ref[...], preferred_element_type=f32) + bf_ref[...]
    o_ref[...] = out.astype(o_ref.dtype)


# ---------------------------------------------------------------------------
# Wrapper
# ---------------------------------------------------------------------------

def generator_forward(params, in_spec, pre_poses, template, *, compute_dtype=jnp.float32):
    """in_spec: (B, aud_dim, T) NCT; pre_poses: (B, n_pre, pose_dim); template: (B, tdim).
    Returns (B, pose_dim, T) like the PyTorch module.

    compute_dtype: jnp.float32 (default; use on v5e) or jnp.bfloat16 (v6e/v7x MXU-native
    operands).  Activations / epilogue are always f32; only dot operands are cast.
    """
    B, aud_dim, T = in_spec.shape
    BT = B * T
    f32 = jnp.float32
    cdt = compute_dtype

    (we0, be0), (we1, be1), (we2, be2) = params["audio_encoder"]
    wm1, bm1, wm2, bm2 = params["pre_pose_encoder"]
    (wd0, bd0), (wd1, bd1), (wd2, bd2), (wd3, bd3) = params["decoder"]

    emb = we0.shape[-1]
    pose_dim = params["final_w"].shape[1]
    n_pre_feat = wm2.shape[1]                  # 16

    # NCT -> (B*T, C): batch folded into the matmul M dimension (interface relayout;
    # trivially fused by jit around the single kernel launch).
    x2d = jnp.transpose(in_spec, (0, 2, 1)).reshape(BT, aud_dim).astype(f32)
    pre2d = pre_poses.reshape(B, -1).astype(f32)
    tmpl = template.astype(f32)

    # Per-row keep masks (constant-folded under jit): 0 at t==0 / t==T-1 of each batch.
    t_idx = jnp.arange(BT, dtype=jnp.int32) % T
    mfirst = (t_idx == 0).astype(f32)[:, None]
    mlast = (t_idx == T - 1).astype(f32)[:, None]
    nf = 1.0 - mfirst
    nl = 1.0 - mlast

    # ---- pre-pose encoder MLP + time-constant decoder[0] bias (wrapper side) ----
    # pre_feat / template are constant over time, so all three conv taps of decoder[0]
    # see the same per-batch value: they collapse to one per-batch bias, with explicit
    # corrections for the tap that reads zero padding at t==0 / t==T-1.  This is off
    # the audio critical path, so it is computed here (tiny XLA dots, jit-fused) and
    # handed to the kernel as a ready-made (BT, emb) additive bias.
    z = jnp.maximum(jnp.dot(pre2d, wm1) + bm1, 0.0)
    p = jnp.dot(z, wm2) + bm2                                     # (B, 16)

    wd0_aud = wd0[:, :emb, :]                                     # (3, emb, emb)
    wp = wd0[:, emb:emb + n_pre_feat, :]                          # (3, 16, emb)
    wt = wd0[:, emb + n_pre_feat:, :]                             # (3, tdim, emb)

    bias_all = jnp.dot(p, wp[0] + wp[1] + wp[2]) + jnp.dot(tmpl, wt[0] + wt[1] + wt[2])
    corr_fst = jnp.dot(p, wp[0]) + jnp.dot(tmpl, wt[0])           # missing tap at t==0
    corr_lst = jnp.dot(p, wp[2]) + jnp.dot(tmpl, wt[2])           # missing tap at t==T-1

    def rep(a):  # (B, emb) -> (BT, emb), per-batch value repeated over the T rows
        return jnp.broadcast_to(a[:, None, :], (B, T, emb)).reshape(BT, emb)

    extra = rep(bias_all) - mfirst * rep(corr_fst) - mlast * rep(corr_lst)   # (BT, emb)

    # ---- prepack weights: (3, Cin, Cout) -> (3*Cin, Cout), matching [left|h|right] ----
    def flat(w):
        return w.reshape(w.shape[0] * w.shape[1], w.shape[2]).astype(cdt)

    def row(b):  # bias as (1, C) so it broadcasts over rows inside the kernel
        return b.reshape(1, -1).astype(f32)

    args = (
        x2d, extra.astype(f32), nf, nl,
        flat(we0), row(be0),
        flat(we1), row(be1),
        flat(we2), row(be2),
        flat(wd0_aud), row(bd0),
        flat(wd1), row(bd1),
        flat(wd2), row(bd2),
        flat(wd3), row(bd3),
        params["final_w"].astype(cdt), row(params["final_b"]),
    )

    out2d = pl.pallas_call(
        functools.partial(_generator_fused_kernel, bt=BT, compute_dtype=cdt),
        out_shape=jax.ShapeDtypeStruct((BT, pose_dim), jnp.float32),
    )(*args)

    # rows -> NCT, matching the PyTorch (B, pose_dim, T) output layout
    return jnp.transpose(out2d.reshape(B, T, pose_dim), (0, 2, 1))


# ---------------------------------------------------------------------------
# Deterministic parameter construction (synthetic; eval-mode BN folded into weights)
# ---------------------------------------------------------------------------

def _fold_bn_into_conv(w, conv_b, gamma, beta, mean, var, eps=1e-5):
    """BN(conv(x)+b) == conv_{w*scale}(x) + ((b-mean)*scale + beta)."""
    scale = gamma / jnp.sqrt(var + eps)
    return w * scale, (conv_b - mean) * scale + beta


def make_conv_bn_relu_params(key, cin, cout, k=3):
    kw, kb, kg, kbe, km, kv = jax.random.split(key, 6)
    w = jax.random.normal(kw, (k, cin, cout), jnp.float32) / math.sqrt(k * cin)
    b = 0.01 * jax.random.normal(kb, (cout,), jnp.float32)
    gamma = 1.0 + 0.1 * jax.random.normal(kg, (cout,), jnp.float32)
    beta = 0.1 * jax.random.normal(kbe, (cout,), jnp.float32)
    mean = 0.05 * jax.random.normal(km, (cout,), jnp.float32)
    var = 1.0 + 0.1 * jnp.abs(jax.random.normal(kv, (cout,), jnp.float32))
    return _fold_bn_into_conv(w, b, gamma, beta, mean, var)


def make_generator_params(key, pose_dim, n_pre_poses, aud_dim, embed_dim, template_dim):
    keys = jax.random.split(key, 16)
    params = {}

    # audio_encoder: AudioPoseEncoder1D(aud->emb, min_layer_nums=3)
    enc_dims = [(aud_dim, embed_dim), (embed_dim, embed_dim), (embed_dim, embed_dim)]
    params["audio_encoder"] = [
        make_conv_bn_relu_params(keys[i], ci, co) for i, (ci, co) in enumerate(enc_dims)
    ]

    # pre_pose_encoder: Linear(n_pre*pose, 32) -> BN(32) -> ReLU -> Linear(32, 16)
    din = n_pre_poses * pose_dim
    k0, k1, k2, k3, k4, k5, k6, k7 = jax.random.split(keys[4], 8)
    w1 = jax.random.normal(k0, (din, 32), jnp.float32) / math.sqrt(din)
    b1 = 0.01 * jax.random.normal(k1, (32,), jnp.float32)
    g1 = 1.0 + 0.1 * jax.random.normal(k2, (32,), jnp.float32)
    be1 = 0.1 * jax.random.normal(k3, (32,), jnp.float32)
    m1 = 0.05 * jax.random.normal(k4, (32,), jnp.float32)
    v1 = 1.0 + 0.1 * jnp.abs(jax.random.normal(k5, (32,), jnp.float32))
    w1f, b1f = _fold_bn_into_conv(w1, b1, g1, be1, m1, v1)
    w2 = jax.random.normal(k6, (32, 16), jnp.float32) / math.sqrt(32)
    b2 = 0.01 * jax.random.normal(k7, (16,), jnp.float32)
    params["pre_pose_encoder"] = (w1f, b1f, w2, b2)

    # decoder: ConvNormRelu(emb+16+templ -> emb), then 3 x (emb -> emb)
    dec_in = embed_dim + 16 + template_dim
    dec_dims = [(dec_in, embed_dim)] + [(embed_dim, embed_dim)] * 3
    params["decoder"] = [
        make_conv_bn_relu_params(keys[6 + i], ci, co) for i, (ci, co) in enumerate(dec_dims)
    ]

    # final_out: Conv1d(embed_dim, pose_dim, kernel=1)
    kfw, kfb = jax.random.split(keys[12], 2)
    params["final_w"] = jax.random.normal(kfw, (embed_dim, pose_dim), jnp.float32) / math.sqrt(embed_dim)
    params["final_b"] = 0.01 * jax.random.normal(kfb, (pose_dim,), jnp.float32)
    return params


# ---------------------------------------------------------------------------
# Pure-JAX reference (literal PyTorch-style path: pad / broadcast / concat)
# ---------------------------------------------------------------------------

def _conv_bn_relu_ref(x_btc, w_kio, bias):
    T = x_btc.shape[1]
    hp = jax.lax.Precision.HIGHEST
    xp = jnp.pad(x_btc, ((0, 0), (1, 1), (0, 0)))
    y = (jnp.einsum("btc,co->bto", xp[:, 0:T], w_kio[0], precision=hp)
         + jnp.einsum("btc,co->bto", xp[:, 1:T + 1], w_kio[1], precision=hp)
         + jnp.einsum("btc,co->bto", xp[:, 2:T + 2], w_kio[2], precision=hp))
    return jnp.maximum(y + bias, 0.0)


def generator_reference(params, in_spec, pre_poses, template):
    B, _, T = in_spec.shape
    hp = jax.lax.Precision.HIGHEST
    x = jnp.transpose(in_spec, (0, 2, 1))
    for (w, b) in params["audio_encoder"]:
        x = _conv_bn_relu_ref(x, w, b)
    w1, b1, w2, b2 = params["pre_pose_encoder"]
    pp = pre_poses.reshape(B, -1)
    h = jnp.maximum(jnp.dot(pp, w1, precision=hp) + b1, 0.0)
    pre_feat = jnp.dot(h, w2, precision=hp) + b2
    feat = jnp.concatenate(
        [x,
         jnp.broadcast_to(pre_feat[:, None, :], (B, T, pre_feat.shape[-1])),
         jnp.broadcast_to(template[:, None, :], (B, T, template.shape[-1]))], axis=-1)
    for (w, b) in params["decoder"]:
        feat = _conv_bn_relu_ref(feat, w, b)
    out = jnp.einsum("btc,co->bto", feat, params["final_w"], precision=hp) + params["final_b"]
    return jnp.transpose(out, (0, 2, 1))


# ---------------------------------------------------------------------------

if __name__ == "__main__":
    B, T = 2, 16
    pose_dim, n_pre_poses = 12, 4
    aud_dim, embed_dim, template_dim = 16, 32, 8

    root = jax.random.PRNGKey(0)
    k_param, k_spec, k_pre, k_templ = jax.random.split(root, 4)

    params = make_generator_params(
        k_param, pose_dim, n_pre_poses, aud_dim, embed_dim, template_dim)

    in_spec = jax.random.normal(k_spec, (B, aud_dim, T), jnp.float32)          # NCT
    pre_poses = jax.random.normal(k_pre, (B, n_pre_poses, pose_dim), jnp.float32)
    # forward() would draw torch.randn for the template; use a deterministic draw here.
    template = jax.random.normal(k_templ, (B, template_dim), jnp.float32)

    fwd_f32 = jax.jit(lambda p, a, b, c: generator_forward(p, a, b, c, compute_dtype=jnp.float32))
    fwd_bf16 = jax.jit(lambda p, a, b, c: generator_forward(p, a, b, c, compute_dtype=jnp.bfloat16))

    out = jax.block_until_ready(fwd_f32(params, in_spec, pre_poses, template))
    ref = jax.block_until_ready(generator_reference(params, in_spec, pre_poses, template))

    assert out.shape == (B, pose_dim, T), out.shape
    assert bool(jnp.all(jnp.isfinite(out)))
    err = float(jnp.max(jnp.abs(out - ref)))
    assert jnp.allclose(out, ref, rtol=5e-2, atol=5e-2), f"f32 path mismatch, max abs err {err}"

    # bf16 dot operands (MXU-native on v6e/v7x); activations / accumulation stay f32.
    out_bf16 = jax.block_until_ready(fwd_bf16(params, in_spec, pre_poses, template))
    assert bool(jnp.all(jnp.isfinite(out_bf16)))
    err16 = float(jnp.max(jnp.abs(out_bf16 - ref)))
    assert jnp.allclose(out_bf16, ref, rtol=2e-1, atol=2e-1), f"bf16 path mismatch, max abs err {err16}"

    print("KERNEL_OK")
</pallas_src>

<mosaic_0001>
module attributes {stable_mosaic.version = 11 : i64} {
  func.func @_generator_fused_kernel(%arg0: memref<32x16xf32, #tpu.memory_space<vmem>>, %arg1: memref<32x32xf32, #tpu.memory_space<vmem>>, %arg2: memref<32x1xf32, #tpu.memory_space<vmem>>, %arg3: memref<32x1xf32, #tpu.memory_space<vmem>>, %arg4: memref<48x32xf32, #tpu.memory_space<vmem>>, %arg5: memref<1x32xf32, #tpu.memory_space<vmem>>, %arg6: memref<96x32xf32, #tpu.memory_space<vmem>>, %arg7: memref<1x32xf32, #tpu.memory_space<vmem>>, %arg8: memref<96x32xf32, #tpu.memory_space<vmem>>, %arg9: memref<1x32xf32, #tpu.memory_space<vmem>>, %arg10: memref<96x32xf32, #tpu.memory_space<vmem>>, %arg11: memref<1x32xf32, #tpu.memory_space<vmem>>, %arg12: memref<96x32xf32, #tpu.memory_space<vmem>>, %arg13: memref<1x32xf32, #tpu.memory_space<vmem>>, %arg14: memref<96x32xf32, #tpu.memory_space<vmem>>, %arg15: memref<1x32xf32, #tpu.memory_space<vmem>>, %arg16: memref<96x32xf32, #tpu.memory_space<vmem>>, %arg17: memref<1x32xf32, #tpu.memory_space<vmem>>, %arg18: memref<32x12xf32, #tpu.memory_space<vmem>>, %arg19: memref<1x12xf32, #tpu.memory_space<vmem>>, %arg20: memref<32x12xf32, #tpu.memory_space<vmem>>) attributes {dimension_semantics = [], scalar_prefetch = 0 : i64, scratch_operands = 0 : i64, tpu.core_type = #tpu.core_type<tc>} {
    %c0 = arith.constant 0 : index
    %c0_0 = arith.constant 0 : index
    %0 = vector.load %arg2[%c0, %c0_0] : memref<32x1xf32, #tpu.memory_space<vmem>>, vector<32x1xf32>
    %c0_1 = arith.constant 0 : index
    %c0_2 = arith.constant 0 : index
    %1 = vector.load %arg3[%c0_1, %c0_2] : memref<32x1xf32, #tpu.memory_space<vmem>>, vector<32x1xf32>
    %c0_3 = arith.constant 0 : index
    %c0_4 = arith.constant 0 : index
    %2 = vector.load %arg0[%c0_3, %c0_4] : memref<32x16xf32, #tpu.memory_space<vmem>>, vector<32x16xf32>
    %c1_i32 = arith.constant 1 : i32
    %3 = tpu.dynamic_rotate %2 by %c1_i32 dim 0 : vector<32x16xf32>, i32 -> vector<32x16xf32>
    %4 = vector.broadcast %0 : vector<32x1xf32> to vector<32x16xf32>
    %5 = arith.mulf %3, %4 : vector<32x16xf32>
    %c31_i32 = arith.constant 31 : i32
    %6 = tpu.dynamic_rotate %2 by %c31_i32 dim 0 : vector<32x16xf32>, i32 -> vector<32x16xf32>
    %7 = vector.broadcast %1 : vector<32x1xf32> to vector<32x16xf32>
    %8 = arith.mulf %6, %7 : vector<32x16xf32>
    %9 = tpu.concatenate %5, %2, %8 in 1 : vector<32x16xf32>, vector<32x16xf32>, vector<32x16xf32> -> vector<32x48xf32>
    %c0_5 = arith.constant 0 : index
    %c0_6 = arith.constant 0 : index
    %10 = vector.load %arg4[%c0_5, %c0_6] : memref<48x32xf32, #tpu.memory_space<vmem>>, vector<48x32xf32>
    %cst = arith.constant dense<0.000000e+00> : vector<32x32xf32>
    %11 = tpu.matmul %9, %10, %cst {dimension_numbers = #tpu.dot_dimension_numbers<[1], [0], [0], [1], [0, 0, 1, 1], [], []>} : vector<32x48xf32>, vector<48x32xf32>, vector<32x32xf32> -> vector<32x32xf32>
    %c0_7 = arith.constant 0 : index
    %c0_8 = arith.constant 0 : index
    %12 = vector.load %arg5[%c0_7, %c0_8] : memref<1x32xf32, #tpu.memory_space<vmem>>, vector<1x32xf32>
    %13 = vector.broadcast %12 : vector<1x32xf32> to vector<32x32xf32>
    %14 = arith.addf %11, %13 : vector<32x32xf32>
    %cst_9 = arith.constant 0.000000e+00 : f32
    %15 = vector.broadcast %cst_9 : f32 to vector<32x32xf32>
    %16 = arith.maximumf %14, %15 : vector<32x32xf32>
    %c1_i32_10 = arith.constant 1 : i32
    %17 = tpu.dynamic_rotate %16 by %c1_i32_10 dim 0 : vector<32x32xf32>, i32 -> vector<32x32xf32>
    %18 = vector.broadcast %0 : vector<32x1xf32> to vector<32x32xf32>
    %19 = arith.mulf %17, %18 : vector<32x32xf32>
    %c31_i32_11 = arith.constant 31 : i32
    %20 = tpu.dynamic_rotate %16 by %c31_i32_11 dim 0 : vector<32x32xf32>, i32 -> vector<32x32xf32>
    %21 = vector.broadcast %1 : vector<32x1xf32> to vector<32x32xf32>
    %22 = arith.mulf %20, %21 : vector<32x32xf32>
    %23 = tpu.concatenate %19, %16, %22 in 1 : vector<32x32xf32>, vector<32x32xf32>, vector<32x32xf32> -> vector<32x96xf32>
    %c0_12 = arith.constant 0 : index
    %c0_13 = arith.constant 0 : index
    %24 = vector.load %arg6[%c0_12, %c0_13] : memref<96x32xf32, #tpu.memory_space<vmem>>, vector<96x32xf32>
    %cst_14 = arith.constant dense<0.000000e+00> : vector<32x32xf32>
    %25 = tpu.matmul %23, %24, %cst_14 {dimension_numbers = #tpu.dot_dimension_numbers<[1], [0], [0], [1], [0, 0, 1, 1], [], []>} : vector<32x96xf32>, vector<96x32xf32>, vector<32x32xf32> -> vector<32x32xf32>
    %c0_15 = arith.constant 0 : index
    %c0_16 = arith.constant 0 : index
    %26 = vector.load %arg7[%c0_15, %c0_16] : memref<1x32xf32, #tpu.memory_space<vmem>>, vector<1x32xf32>
    %27 = vector.broadcast %26 : vector<1x32xf32> to vector<32x32xf32>
    %28 = arith.addf %25, %27 : vector<32x32xf32>
    %cst_17 = arith.constant 0.000000e+00 : f32
    %29 = vector.broadcast %cst_17 : f32 to vector<32x32xf32>
    %30 = arith.maximumf %28, %29 : vector<32x32xf32>
    %c1_i32_18 = arith.constant 1 : i32
    %31 = tpu.dynamic_rotate %30 by %c1_i32_18 dim 0 : vector<32x32xf32>, i32 -> vector<32x32xf32>
    %32 = vector.broadcast %0 : vector<32x1xf32> to vector<32x32xf32>
    %33 = arith.mulf %31, %32 : vector<32x32xf32>
    %c31_i32_19 = arith.constant 31 : i32
    %34 = tpu.dynamic_rotate %30 by %c31_i32_19 dim 0 : vector<32x32xf32>, i32 -> vector<32x32xf32>
    %35 = vector.broadcast %1 : vector<32x1xf32> to vector<32x32xf32>
    %36 = arith.mulf %34, %35 : vector<32x32xf32>
    %37 = tpu.concatenate %33, %30, %36 in 1 : vector<32x32xf32>, vector<32x32xf32>, vector<32x32xf32> -> vector<32x96xf32>
    %c0_20 = arith.constant 0 : index
    %c0_21 = arith.constant 0 : index
    %38 = vector.load %arg8[%c0_20, %c0_21] : memref<96x32xf32, #tpu.memory_space<vmem>>, vector<96x32xf32>
    %cst_22 = arith.constant dense<0.000000e+00> : vector<32x32xf32>
    %39 = tpu.matmul %37, %38, %cst_22 {dimension_numbers = #tpu.dot_dimension_numbers<[1], [0], [0], [1], [0, 0, 1, 1], [], []>} : vector<32x96xf32>, vector<96x32xf32>, vector<32x32xf32> -> vector<32x32xf32>
    %c0_23 = arith.constant 0 : index
    %c0_24 = arith.constant 0 : index
    %40 = vector.load %arg9[%c0_23, %c0_24] : memref<1x32xf32, #tpu.memory_space<vmem>>, vector<1x32xf32>
    %41 = vector.broadcast %40 : vector<1x32xf32> to vector<32x32xf32>
    %42 = arith.addf %39, %41 : vector<32x32xf32>
    %cst_25 = arith.constant 0.000000e+00 : f32
    %43 = vector.broadcast %cst_25 : f32 to vector<32x32xf32>
    %44 = arith.maximumf %42, %43 : vector<32x32xf32>
    %c0_26 = arith.constant 0 : index
    %c0_27 = arith.constant 0 : index
    %45 = vector.load %arg1[%c0_26, %c0_27] : memref<32x32xf32, #tpu.memory_space<vmem>>, vector<32x32xf32>
    %c1_i32_28 = arith.constant 1 : i32
    %46 = tpu.dynamic_rotate %44 by %c1_i32_28 dim 0 : vector<32x32xf32>, i32 -> vector<32x32xf32>
    %47 = vector.broadcast %0 : vector<32x1xf32> to vector<32x32xf32>
    %48 = arith.mulf %46, %47 : vector<32x32xf32>
    %c31_i32_29 = arith.constant 31 : i32
    %49 = tpu.dynamic_rotate %44 by %c31_i32_29 dim 0 : vector<32x32xf32>, i32 -> vector<32x32xf32>
    %50 = vector.broadcast %1 : vector<32x1xf32> to vector<32x32xf32>
    %51 = arith.mulf %49, %50 : vector<32x32xf32>
    %52 = tpu.concatenate %48, %44, %51 in 1 : vector<32x32xf32>, vector<32x32xf32>, vector<32x32xf32> -> vector<32x96xf32>
    %c0_30 = arith.constant 0 : index
    %c0_31 = arith.constant 0 : index
    %53 = vector.load %arg10[%c0_30, %c0_31] : memref<96x32xf32, #tpu.memory_space<vmem>>, vector<96x32xf32>
    %cst_32 = arith.constant dense<0.000000e+00> : vector<32x32xf32>
    %54 = tpu.matmul %52, %53, %cst_32 {dimension_numbers = #tpu.dot_dimension_numbers<[1], [0], [0], [1], [0, 0, 1, 1], [], []>} : vector<32x96xf32>, vector<96x32xf32>, vector<32x32xf32> -> vector<32x32xf32>
    %c0_33 = arith.constant 0 : index
    %c0_34 = arith.constant 0 : index
    %55 = vector.load %arg11[%c0_33, %c0_34] : memref<1x32xf32, #tpu.memory_space<vmem>>, vector<1x32xf32>
    %56 = vector.broadcast %55 : vector<1x32xf32> to vector<32x32xf32>
    %57 = arith.addf %54, %56 : vector<32x32xf32>
    %58 = arith.addf %57, %45 : vector<32x32xf32>
    %cst_35 = arith.constant 0.000000e+00 : f32
    %59 = vector.broadcast %cst_35 : f32 to vector<32x32xf32>
    %60 = arith.maximumf %58, %59 : vector<32x32xf32>
    %c1_i32_36 = arith.constant 1 : i32
    %61 = tpu.dynamic_rotate %60 by %c1_i32_36 dim 0 : vector<32x32xf32>, i32 -> vector<32x32xf32>
    %62 = vector.broadcast %0 : vector<32x1xf32> to vector<32x32xf32>
    %63 = arith.mulf %61, %62 : vector<32x32xf32>
    %c31_i32_37 = arith.constant 31 : i32
    %64 = tpu.dynamic_rotate %60 by %c31_i32_37 dim 0 : vector<32x32xf32>, i32 -> vector<32x32xf32>
    %65 = vector.broadcast %1 : vector<32x1xf32> to vector<32x32xf32>
    %66 = arith.mulf %64, %65 : vector<32x32xf32>
    %67 = tpu.concatenate %63, %60, %66 in 1 : vector<32x32xf32>, vector<32x32xf32>, vector<32x32xf32> -> vector<32x96xf32>
    %c0_38 = arith.constant 0 : index
    %c0_39 = arith.constant 0 : index
    %68 = vector.load %arg12[%c0_38, %c0_39] : memref<96x32xf32, #tpu.memory_space<vmem>>, vector<96x32xf32>
    %cst_40 = arith.constant dense<0.000000e+00> : vector<32x32xf32>
    %69 = tpu.matmul %67, %68, %cst_40 {dimension_numbers = #tpu.dot_dimension_numbers<[1], [0], [0], [1], [0, 0, 1, 1], [], []>} : vector<32x96xf32>, vector<96x32xf32>, vector<32x32xf32> -> vector<32x32xf32>
    %c0_41 = arith.constant 0 : index
    %c0_42 = arith.constant 0 : index
    %70 = vector.load %arg13[%c0_41, %c0_42] : memref<1x32xf32, #tpu.memory_space<vmem>>, vector<1x32xf32>
    %71 = vector.broadcast %70 : vector<1x32xf32> to vector<32x32xf32>
    %72 = arith.addf %69, %71 : vector<32x32xf32>
    %cst_43 = arith.constant 0.000000e+00 : f32
    %73 = vector.broadcast %cst_43 : f32 to vector<32x32xf32>
    %74 = arith.maximumf %72, %73 : vector<32x32xf32>
    %c1_i32_44 = arith.constant 1 : i32
    %75 = tpu.dynamic_rotate %74 by %c1_i32_44 dim 0 : vector<32x32xf32>, i32 -> vector<32x32xf32>
    %76 = vector.broadcast %0 : vector<32x1xf32> to vector<32x32xf32>
    %77 = arith.mulf %75, %76 : vector<32x32xf32>
    %c31_i32_45 = arith.constant 31 : i32
    %78 = tpu.dynamic_rotate %74 by %c31_i32_45 dim 0 : vector<32x32xf32>, i32 -> vector<32x32xf32>
    %79 = vector.broadcast %1 : vector<32x1xf32> to vector<32x32xf32>
    %80 = arith.mulf %78, %79 : vector<32x32xf32>
    %81 = tpu.concatenate %77, %74, %80 in 1 : vector<32x32xf32>, vector<32x32xf32>, vector<32x32xf32> -> vector<32x96xf32>
    %c0_46 = arith.constant 0 : index
    %c0_47 = arith.constant 0 : index
    %82 = vector.load %arg14[%c0_46, %c0_47] : memref<96x32xf32, #tpu.memory_space<vmem>>, vector<96x32xf32>
    %cst_48 = arith.constant dense<0.000000e+00> : vector<32x32xf32>
    %83 = tpu.matmul %81, %82, %cst_48 {dimension_numbers = #tpu.dot_dimension_numbers<[1], [0], [0], [1], [0, 0, 1, 1], [], []>} : vector<32x96xf32>, vector<96x32xf32>, vector<32x32xf32> -> vector<32x32xf32>
    %c0_49 = arith.constant 0 : index
    %c0_50 = arith.constant 0 : index
    %84 = vector.load %arg15[%c0_49, %c0_50] : memref<1x32xf32, #tpu.memory_space<vmem>>, vector<1x32xf32>
    %85 = vector.broadcast %84 : vector<1x32xf32> to vector<32x32xf32>
    %86 = arith.addf %83, %85 : vector<32x32xf32>
    %cst_51 = arith.constant 0.000000e+00 : f32
    %87 = vector.broadcast %cst_51 : f32 to vector<32x32xf32>
    %88 = arith.maximumf %86, %87 : vector<32x32xf32>
    %c1_i32_52 = arith.constant 1 : i32
    %89 = tpu.dynamic_rotate %88 by %c1_i32_52 dim 0 : vector<32x32xf32>, i32 -> vector<32x32xf32>
    %90 = vector.broadcast %0 : vector<32x1xf32> to vector<32x32xf32>
    %91 = arith.mulf %89, %90 : vector<32x32xf32>
    %c31_i32_53 = arith.constant 31 : i32
    %92 = tpu.dynamic_rotate %88 by %c31_i32_53 dim 0 : vector<32x32xf32>, i32 -> vector<32x32xf32>
    %93 = vector.broadcast %1 : vector<32x1xf32> to vector<32x32xf32>
    %94 = arith.mulf %92, %93 : vector<32x32xf32>
    %95 = tpu.concatenate %91, %88, %94 in 1 : vector<32x32xf32>, vector<32x32xf32>, vector<32x32xf32> -> vector<32x96xf32>
    %c0_54 = arith.constant 0 : index
    %c0_55 = arith.constant 0 : index
    %96 = vector.load %arg16[%c0_54, %c0_55] : memref<96x32xf32, #tpu.memory_space<vmem>>, vector<96x32xf32>
    %cst_56 = arith.constant dense<0.000000e+00> : vector<32x32xf32>
    %97 = tpu.matmul %95, %96, %cst_56 {dimension_numbers = #tpu.dot_dimension_numbers<[1], [0], [0], [1], [0, 0, 1, 1], [], []>} : vector<32x96xf32>, vector<96x32xf32>, vector<32x32xf32> -> vector<32x32xf32>
    %c0_57 = arith.constant 0 : index
    %c0_58 = arith.constant 0 : index
    %98 = vector.load %arg17[%c0_57, %c0_58] : memref<1x32xf32, #tpu.memory_space<vmem>>, vector<1x32xf32>
    %99 = vector.broadcast %98 : vector<1x32xf32> to vector<32x32xf32>
    %100 = arith.addf %97, %99 : vector<32x32xf32>
    %cst_59 = arith.constant 0.000000e+00 : f32
    %101 = vector.broadcast %cst_59 : f32 to vector<32x32xf32>
    %102 = arith.maximumf %100, %101 : vector<32x32xf32>
    %c0_60 = arith.constant 0 : index
    %c0_61 = arith.constant 0 : index
    %103 = vector.load %arg18[%c0_60, %c0_61] : memref<32x12xf32, #tpu.memory_space<vmem>>, vector<32x12xf32>
    %cst_62 = arith.constant dense<0.000000e+00> : vector<32x12xf32>
    %104 = tpu.matmul %102, %103, %cst_62 {dimension_numbers = #tpu.dot_dimension_numbers<[1], [0], [0], [1], [0, 0, 1, 1], [], []>} : vector<32x32xf32>, vector<32x12xf32>, vector<32x12xf32> -> vector<32x12xf32>
    %c0_63 = arith.constant 0 : index
    %c0_64 = arith.constant 0 : index
    %105 = vector.load %arg19[%c0_63, %c0_64] : memref<1x12xf32, #tpu.memory_space<vmem>>, vector<1x12xf32>
    %106 = vector.broadcast %105 : vector<1x12xf32> to vector<32x12xf32>
    %107 = arith.addf %104, %106 : vector<32x12xf32>
    %c0_65 = arith.constant 0 : index
    %c0_66 = arith.constant 0 : index
    %108 = vector.load %arg20[%c0_65, %c0_66] : memref<32x12xf32, #tpu.memory_space<vmem>>, vector<32x12xf32>
    tpu.vector_store %arg20[%c0_65, %c0_66], %107 {strides = array<i32>} : memref<32x12xf32, #tpu.memory_space<vmem>>, vector<32x12xf32>,
    return
  }
}

</mosaic_0001>

<bundles_post_ra>
// kernel: _lambda_.1
= control target key start
LH: loop header
LB: loop body
LE: loop exit
PB: predicated region body
PF: predicated region fallthrough
CT: control target
= control target key end

     0   :  { %v81_v0 = vlaneseq  ;;  %v2069_v1 = vmov 0   ;;  %s2070_s30 = smov 16   ;;  %vm177_vm2 = vcmask 130048   ;;  %vm182_vm3 = vcmask 261120   ;;  %s2839_s3 = inlined_call_operand.vmem [shape: f32[32,1], index: 3, kind: input, shape index: {}]   ;;  %s2840_s0 = inlined_call_operand.vmem [shape: f32[32,16], index: 0, kind: input, shape index: {}]   ;;  %s2841_s2 = inlined_call_operand.vmem [shape: f32[32,1], index: 2, kind: input, shape index: {}]   ;;  %s2842_s4 = inlined_call_operand.vmem [shape: f32[48,32], index: 4, kind: input, shape index: {}]   ;;  %s2843_s6 = inlined_call_operand.vmem [shape: f32[96,32], index: 6, kind: input, shape index: {}]   ;;  %s2844_s5 = inlined_call_operand.vmem [shape: f32[1,32], index: 5, kind: input, shape index: {}]   ;;  %s2845_s8 = inlined_call_operand.vmem [shape: f32[96,32], index: 8, kind: input, shape index: {}]   ;;  %s2846_s7 = inlined_call_operand.vmem [shape: f32[1,32], index: 7, kind: input, shape index: {}]   ;;  %s2847_s10 = inlined_call_operand.vmem [shape: f32[96,32], index: 10, kind: input, shape index: {}]   ;;  %s2848_s9 = inlined_call_operand.vmem [shape: f32[1,32], index: 9, kind: input, shape index: {}]   ;;  %s2849_s12 = inlined_call_operand.vmem [shape: f32[96,32], index: 12, kind: input, shape index: {}]   ;;  %s2850_s11 = inlined_call_operand.vmem [shape: f32[1,32], index: 11, kind: input, shape index: {}]   ;;  %s2851_s1 = inlined_call_operand.vmem [shape: f32[32,32], index: 1, kind: input, shape index: {}]   ;;  %s2852_s14 = inlined_call_operand.vmem [shape: f32[96,32], index: 14, kind: input, shape index: {}]   ;;  %s2853_s13 = inlined_call_operand.vmem [shape: f32[1,32], index: 13, kind: input, shape index: {}]   ;;  %s2854_s16 = inlined_call_operand.vmem [shape: f32[96,32], index: 16, kind: input, shape index: {}]   ;;  %s2855_s15 = inlined_call_operand.vmem [shape: f32[1,32], index: 15, kind: input, shape index: {}]   ;;  %s2856_s18 = inlined_call_operand.vmem [shape: f32[32,12], index: 18, kind: input, shape index: {}]   ;;  %s2857_s17 = inlined_call_operand.vmem [shape: f32[1,32], index: 17, kind: input, shape index: {}]   ;;  %s2858_s19 = inlined_call_operand.vmem [shape: f32[1,12], index: 19, kind: input, shape index: {}]   ;;  %s2859_s20 = inlined_call_operand.vmem [shape: f32[32,12], index: 20, kind: output, shape index: {}]  }
   0x1   :  { %2865 = sst [smem:[#allocation2_spill]] %s2839_s3  ;;  %2068 = vset.pattern.permute.xlu1 %v2069_v1  ;;  %2067 = vset.pattern.permute.xlu0 %v2069_v1  ;;  %vm200_vm4 = vcmask 392192   ;;  %vm362_vm5 = vcmask 523264   ;;  %vm386_vm6 = vcmask 785408   ;;  %vm1524_vm7 = vcmask 97280  }
   0x2   :  { %2866 = sst [smem:[#allocation3_spill]] %s2840_s0  ;;  %s2870_s23 = sld [smem:[#allocation2_spill]]  ;;  %v2184_v4 = vshrl.u32 %v81_v0, 7 }
   0x3   :  { %2867 = sst [smem:[#allocation4_spill]] %s2841_s2  ;;  %s2871_s29 = sld [smem:[#allocation3_spill]] }
   0x4   :  { %2868 = sst [smem:[#allocation5_spill]] %s2842_s4  ;;  %vm116_vm0 = vcmp.lt.s32.totalorder %v2184_v4, 7  ;;  %s2872_s25 = sld [smem:[#allocation4_spill]]  ;;  %vm83_vm1 = vcmp.lt.s32.totalorder %v2184_v4, 1 }
   0x5   :  { %2869 = sst [smem:[#allocation6_spill]] %s2843_s6  ;;  %s2873_s0 = sld [smem:[#allocation5_spill]] }
   0x6   :  { %s2874_s21 = sld [smem:[#allocation6_spill]] }
   0x8   :  { %v71_v2 = vld [vmem:[%s2870_s23 + $0x10] sm:$0xff]  ;;  %v69_v3 = vld [vmem:[%s2870_s23] sm:$0xff]  ;;  %v72_v5 = vld [vmem:[%s2870_s23 + $0x18] sm:$0xff] }
   0x9   :  { %133 = vperm.xlu1 %2068, %v71_v2   ;;  %123 = vperm.xlu0 %2067, %v69_v3   ;;  %v70_v6 = vld [vmem:[%s2870_s23 + $0x8] sm:$0xff]  ;;  %v73_v10 = vld [vmem:[%s2871_s29] sm:$0xff]  ;;  %v76_v11 = vld [vmem:[%s2871_s29 + $0x18] sm:$0xff] }
   0xa   :  { %v74_v7 = vld [vmem:[%s2871_s29 + $0x8] sm:$0xff]  ;;  %v77_v12 = vrot.slane %v73_v10, 7  ;;  %v112_v13 = vrot.slane %v73_v10, 1  ;;  %v80_v14 = vrot.slane %v76_v11, 7  ;;  %v115_v15 = vrot.slane %v76_v11, 1  ;;  %v75_v16 = vld [vmem:[%s2871_s29 + $0x10] sm:$0xff] }
   0xb   :  { %v78_v8 = vrot.slane %v74_v7, 7  ;;  %v113_v9 = vrot.slane %v74_v7, 1  ;;  %v114_v17 = vrot.slane %v75_v16, 1  ;;  %v66_v18 = vld [vmem:[%s2872_s25 + $0x8] sm:$0xff]  ;;  %v65_v19 = vld [vmem:[%s2872_s25] sm:$0xff]  ;;  %v79_v24 = vrot.slane %v75_v16, 7 }
   0xc   :  { %v120_v21 = vsel %vm116_vm0, %v115_v15, %v112_v13  ;;  %v87_v26 = vsel %vm83_vm1, %v80_v14, %v77_v12  ;;  %v68_v27 = vld [vmem:[%s2872_s25 + $0x18] sm:$0xff]  ;;  %v67_v28 = vld [vmem:[%s2872_s25 + $0x10] sm:$0xff]  ;;  %v187_v31 = vld [vmem:[%s2873_s0] sm:$0xff]  ;;  %s2071_s29 = smov 32  }
   0xd   :  { %138 = vperm.xlu1 %2068, %v72_v5   ;;  %128 = vperm.xlu0 %2067, %v70_v6   ;;  %v119_v20 = vsel %vm116_vm0, %v112_v13, %v113_v9  ;;  %v118_v22 = vsel %vm116_vm0, %v113_v9, %v114_v17  ;;  %v117_v23 = vsel %vm116_vm0, %v114_v17, %v115_v15  ;;  %v188_v32 = vld [vmem:[%s2873_s0 + $0x8] sm:$0xff]  ;;  %v189_v33 = vld [vmem:[%s2873_s0 + $0x10] sm:$0xff]  ;;  %v190_v35 = vld [vmem:[%s2873_s0 + $0x18] sm:$0xff] }
   0xe   :  { %v86_v25 = vsel %vm83_vm1, %v77_v12, %v78_v8  ;;  %v2232_v29 = vsel %vm83_vm1, %v79_v24, %v80_v14  ;;  %v85_v30 = vsel %vm83_vm1, %v78_v8, %v79_v24  ;;  %v1899_v34 = vpack.c.bf16 %v188_v32, %v187_v31  ;;  %v191_v37 = vld [vmem:[%s2873_s0 + $0x20] sm:$0xff]  ;;  %v192_v38 = vld [vmem:[%s2873_s0 + $0x28] sm:$0xff]  ;;  %v370_v13 = vld [vmem:[%s2874_s21 + $0x18] sm:$0xff] }
   0xf   :  { %v1903_v36 = vpack.c.bf16 %v190_v35, %v189_v33  ;;  %v1907_v39 = vpack.c.bf16 %v192_v38, %v191_v37  ;;  %v367_v9 = vld [vmem:[%s2874_s21] sm:$0xff]  ;;  %v377_v24 = vld [vmem:[%s2874_s21 + $0x50] sm:$0xff] }
  0x10   :  { %1900 = vmatprep.subr.bf16.mxu0 %v1899_v34  ;;  %v371_v15 = vld [vmem:[%s2874_s21 + $0x20] sm:$0xff] }
  0x11   :  { %95 = vperm.xlu1 %2068, %v66_v18   ;;  %90 = vperm.xlu0 %2067, %v65_v19   ;;  %v373_v18 = vld [vmem:[%s2874_s21 + $0x30] sm:$0xff]  ;;  %v374_v19 = vld [vmem:[%s2874_s21 + $0x38] sm:$0xff] }
  0x12   :  { %1902 = vmatpush3.bf16.msra.mxu0 %v1899_v34 }
  0x13   :  { %1904 = vmatprep.subr.bf16.mxu0 %v1903_v36 }
  0x15   :  { %105 = vperm.xlu1 %2068, %v68_v27   ;;  %100 = vperm.xlu0 %2067, %v67_v28  }
  0x16   :  { %1906 = vmatpush3.bf16.msra.mxu0 %v1903_v36 }
  0x17   :  { %1908 = vmatprep.subr.bf16.mxu0 %v1907_v39 }
  0x19   :  { %151 = vrot.lane.b32.xlu1 %v74_v7, %s2070_s30  ;;  %149 = vrot.lane.b32.xlu0 %v73_v10, %s2070_s30  ;;  %v368_v10 = vld [vmem:[%s2874_s21 + $0x8] sm:$0xff] }
  0x1a   :  { %1910 = vmatpush3.bf16.msra.mxu0 %v1907_v39  ;;  %v1911_v12 = vpack.c.bf16 %v368_v10, %v367_v9 }
  0x1c   :  { %1912 = vmatprep.subr.bf16.mxu1 %v1911_v12 }
  0x1d   :  { %155 = vrot.lane.b32.xlu1 %v76_v11, %s2070_s30  ;;  %153 = vrot.lane.b32.xlu0 %v75_v16, %s2070_s30  ;;  %v369_v11 = vld [vmem:[%s2874_s21 + $0x10] sm:$0xff]  ;;  %v372_v16 = vld [vmem:[%s2874_s21 + $0x28] sm:$0xff] }
  0x1e   :  { %v1915_v14 = vpack.c.bf16 %v370_v13, %v369_v11  ;;  %1914 = vmatpush3.bf16.msra.mxu1 %v1911_v12  ;;  %v1919_v17 = vpack.c.bf16 %v372_v16, %v371_v15 }
  0x20   :  { %1916 = vmatprep.subr.bf16.mxu1 %v1915_v14 }
  0x22   :  { %1918 = vmatpush3.bf16.msra.mxu1 %v1915_v14 }
  0x23   :  { %1920 = vmatprep.subr.bf16.mxu1 %v1919_v17 }
  0x26   :  { %1922 = vmatpush3.bf16.msra.mxu1 %v1919_v17 }
  0x88   :  { %v2254_v40 = vpop.permute.xlu1 %133  ;;  %v2256_v41 = vpop.permute.xlu0 %123 }
  0x89   :  { %v141_v42 = vmul.f32 %v2256_v41, %v119_v20  ;;  %v143_v43 = vmul.f32 %v2254_v40, %v117_v23  ;;  %v1923_v20 = vpack.c.bf16 %v374_v19, %v373_v18 }
  0x8b   :  { %165 = vrot.lane.b32.xlu0 %v141_v42, %s2071_s29  ;;  %1924 = vmatprep.subr.bf16.mxu1 %v1923_v20 }
  0x8c   :  { %v2261_v44 = vpop.permute.xlu0 %128  ;;  %v2264_v46 = vpop.permute.xlu1 %138  ;;  %1926 = vmatpush3.bf16.msra.mxu1 %v1923_v20 }
  0x8d   :  { %v142_v45 = vmul.f32 %v2261_v44, %v118_v22  ;;  %v144_v47 = vmul.f32 %v2264_v46, %v120_v21  ;;  %v375_v21 = vld [vmem:[%s2874_s21 + $0x40] sm:$0xff]  ;;  %v376_v22 = vld [vmem:[%s2874_s21 + $0x48] sm:$0xff] }
  0x8e   :  { %v1927_v23 = vpack.c.bf16 %v376_v22, %v375_v21 }
  0x8f   :  { %167 = vrot.lane.b32.xlu1 %v142_v45, %s2071_s29  ;;  %169 = vrot.lane.b32.xlu0 %v143_v43, %s2071_s29 }
  0x90   :  { %v2270_v48 = vpop.permute.xlu0 %90  ;;  %v2272_v49 = vpop.permute.xlu1 %95  ;;  %1928 = vmatprep.subr.bf16.mxu1 %v1927_v23 }
  0x91   :  { %v108_v55 = vmul.f32 %v2270_v48, %v87_v26  ;;  %v109_v60 = vmul.f32 %v2272_v49, %v86_v25  ;;  %1930 = vmatpush3.bf16.msra.mxu1 %v1927_v23  ;;  %v378_v25 = vld [vmem:[%s2874_s21 + $0x58] sm:$0xff]  ;;  %v1533_v26 = vld [vmem:[%s2844_s5] ss:$0 sm:$0xff]  ;;  %s2072_s5 = smov 64  }
  0x92   :  { %v1931_v27 = vpack.c.bf16 %v378_v25, %v377_v24  ;;  %v552_v25 = vld [vmem:[%s2845_s8] sm:$0xff] }
  0x93   :  { %171 = vrot.lane.b32.xlu1 %v144_v47, %s2071_s29 }
  0x94   :  { %v2274_v50 = vpop.permute.xlu0 %100  ;;  %v2276_v51 = vpop.permute.xlu1 %105  ;;  %1932 = vmatprep.subr.bf16.mxu1 %v1931_v27 }
  0x95   :  { %v110_v61 = vmul.f32 %v2274_v50, %v85_v30  ;;  %v111_v5 = vmul.f32 %v2276_v51, %v2232_v29  ;;  %1934 = vmatpush3.bf16.msra.mxu1 %v1931_v27  ;;  %v554_v27 = vld [vmem:[%s2845_s8 + $0x10] sm:$0xff] }
  0x98   :  { %v150_v52 = vpop.permute.xlu0 %149  ;;  %v152_v53 = vpop.permute.xlu1 %151 }
  0x99   :  { %v178_v56 = vsel %vm177_vm2, %v108_v55, %v150_v52  ;;  %v179_v62 = vsel %vm177_vm2, %v109_v60, %v152_v53 }
  0x9c   :  { %v154_v54 = vpop.permute.xlu0 %153  ;;  %v156_v57 = vpop.permute.xlu1 %155 }
  0x9d   :  { %v180_v63 = vsel %vm177_vm2, %v110_v61, %v154_v54  ;;  %v181_v6 = vsel %vm177_vm2, %v111_v5, %v156_v57 }
  0xfd   :  { %v166_v58 = vpop.permute.xlu0 %165 }
  0xfe   :  { %v183_v59 = vsel %vm182_vm3, %v178_v56, %v166_v58 }
  0xff   :  { %1699 = vmatprep.mubr.msk.f32.mxu0 %vm200_vm4, %v183_v59 }
 0x101   :  { %v168_v0 = vpop.permute.xlu1 %167  ;;  %v170_v1 = vpop.permute.xlu0 %169 }
 0x102   :  { %v184_v2 = vsel %vm182_vm3, %v179_v62, %v168_v0  ;;  %v185_v3 = vsel %vm182_vm3, %v180_v63, %v170_v1 }
 0x103   :  { %1700 = vmatmul.mubr.msk.f32.vlgmr.msra.gmra.mrb[0].mxu0 %vm200_vm4, %v184_v2 }
 0x104   :  { %1702 = vmatprep.mubr.msk.f32.mxu0 %vm200_vm4, %v185_v3 }
 0x105   :  { %v172_v7 = vpop.permute.xlu1 %171 }
 0x106   :  { %v186_v8 = vsel %vm182_vm3, %v181_v6, %v172_v7 }
 0x107   :  { %1703 = vmatmul.mubr.msk.f32.gmra.mrb[2].mxu0 %vm200_vm4, %v186_v8 }
 0x1d6   :  { %v1701_v28 = vpop.f32.mrb[0].mxu0 }
 0x1d7   :  { %v285_v29 = vadd.f32 %v1701_v28, %v1533_v26  ;;  %v279_v30 = vpop.f32.mrb[1].mxu0 }
 0x1d8   :  { %v280_v31 = vadd.f32 %v1533_v26, %v279_v30 }
 0x1d9   :  { %v299_v32 = vmax.f32 %v285_v29, 0.0  ;;  %v555_v29 = vld [vmem:[%s2845_s8 + $0x18] sm:$0xff] }
 0x1da   :  { %v298_v33 = vmax.f32 %v280_v31, 0.0  ;;  %v1704_v34 = vpop.f32.mrb[2].mxu0  ;;  %v1939_v30 = vpack.c.bf16 %v555_v29, %v554_v27  ;;  %v556_v31 = vld [vmem:[%s2845_s8 + $0x20] sm:$0xff] }
 0x1db   :  { %v303_v35 = vrot.slane %v299_v32, 7  ;;  %v315_v36 = vrot.slane %v299_v32, 1  ;;  %v295_v37 = vadd.f32 %v1704_v34, %v1533_v26  ;;  %332 = vrot.lane.b32.xlu1 %v299_v32, %s2071_s29  ;;  %v289_v38 = vpop.f32.mrb[3].mxu0  ;;  %v557_v32 = vld [vmem:[%s2845_s8 + $0x28] sm:$0xff]  ;;  %v558_v34 = vld [vmem:[%s2845_s8 + $0x30] sm:$0xff] }
 0x1dc   :  { %v302_v39 = vrot.slane %v298_v33, 7  ;;  %v314_v42 = vrot.slane %v298_v33, 1  ;;  %v290_v43 = vadd.f32 %v1533_v26, %v289_v38  ;;  %330 = vrot.lane.b32.xlu0 %v298_v33, %s2071_s29  ;;  %v553_v26 = vld [vmem:[%s2845_s8 + $0x8] sm:$0xff]  ;;  %v1943_v33 = vpack.c.bf16 %v557_v32, %v556_v31 }
 0x1dd   :  { %v301_v45 = vmax.f32 %v295_v37, 0.0  ;;  %v1935_v28 = vpack.c.bf16 %v553_v26, %v552_v25  ;;  %v560_v37 = vld [vmem:[%s2845_s8 + $0x40] sm:$0xff]  ;;  %v561_v38 = vld [vmem:[%s2845_s8 + $0x48] sm:$0xff] }
 0x1de   :  { %v300_v47 = vmax.f32 %v290_v43, 0.0  ;;  %v320_v52 = vsel %vm116_vm0, %v314_v42, %v315_v36  ;;  %v308_v53 = vsel %vm83_vm1, %v302_v39, %v303_v35  ;;  %v563_v43 = vld [vmem:[%s2845_s8 + $0x58] sm:$0xff] }
 0x1df   :  { %v305_v54 = vrot.slane %v301_v45, 7  ;;  %v317_v55 = vrot.slane %v301_v45, 1  ;;  %336 = vrot.lane.b32.xlu1 %v301_v45, %s2071_s29  ;;  %v322_v60 = vmul.f32 %v320_v52, %v2256_v41  ;;  %v311_v10 = vmul.f32 %v308_v53, %v2272_v49  ;;  %1936 = vmatprep.subr.bf16.mxu0 %v1935_v28  ;;  %v1538_v45 = vld [vmem:[%s2846_s7] ss:$0 sm:$0xff] }
 0x1e0   :  { %v304_v56 = vrot.slane %v300_v47, 7  ;;  %v316_v57 = vrot.slane %v300_v47, 1  ;;  %334 = vrot.lane.b32.xlu0 %v300_v47, %s2071_s29  ;;  %1938 = vmatpush3.bf16.msra.mxu0 %v1935_v28 }
 0x1e1   :  { %v321_v58 = vsel %vm116_vm0, %v317_v55, %v314_v42  ;;  %v309_v59 = vsel %vm83_vm1, %v305_v54, %v302_v39  ;;  %1940 = vmatprep.subr.bf16.mxu0 %v1939_v30  ;;  %v1951_v39 = vpack.c.bf16 %v561_v38, %v560_v37  ;;  %v562_v42 = vld [vmem:[%s2845_s8 + $0x50] sm:$0xff] }
 0x1e2   :  { %v319_v61 = vsel %vm116_vm0, %v315_v36, %v316_v57  ;;  %v318_v62 = vsel %vm116_vm0, %v316_v57, %v317_v55  ;;  %v306_v0 = vsel %vm83_vm1, %v304_v56, %v305_v54  ;;  %v307_v1 = vsel %vm83_vm1, %v303_v35, %v304_v56  ;;  %v559_v35 = vld [vmem:[%s2845_s8 + $0x38] sm:$0xff] }
 0x1e3   :  { %v323_v63 = vmul.f32 %v319_v61, %v2261_v44  ;;  %v324_v2 = vmul.f32 %v318_v62, %v2254_v40  ;;  %v325_v3 = vmul.f32 %v321_v58, %v2264_v46  ;;  %v310_v9 = vmul.f32 %v309_v59, %v2270_v48 }
 0x1e4   :  { %346 = vrot.lane.b32.xlu0 %v322_v60, %s2072_s5  ;;  %v312_v16 = vmul.f32 %v307_v1, %v2274_v50  ;;  %v313_v18 = vmul.f32 %v306_v0, %v2276_v51  ;;  %1942 = vmatpush3.bf16.msra.mxu0 %v1939_v30  ;;  %v1947_v36 = vpack.c.bf16 %v559_v35, %v558_v34 }
 0x1e5   :  { %348 = vrot.lane.b32.xlu1 %v323_v63, %s2072_s5  ;;  %1944 = vmatprep.subr.bf16.mxu0 %v1943_v33  ;;  %v1955_v47 = vpack.c.bf16 %v563_v43, %v562_v42  ;;  %v740_v43 = vld [vmem:[%s2847_s10] sm:$0xff] }
 0x1e8   :  { %350 = vrot.lane.b32.xlu0 %v324_v2, %s2072_s5  ;;  %1946 = vmatpush3.bf16.msra.mxu0 %v1943_v33 }
 0x1e9   :  { %352 = vrot.lane.b32.xlu1 %v325_v3, %s2072_s5  ;;  %1948 = vmatprep.subr.bf16.mxu0 %v1947_v36 }
 0x1ec   :  { %1950 = vmatpush3.bf16.msra.mxu0 %v1947_v36 }
 0x1ed   :  { %1952 = vmatprep.subr.bf16.mxu0 %v1951_v39 }
 0x1f0   :  { %1954 = vmatpush3.bf16.msra.mxu0 %v1951_v39 }
 0x1f1   :  { %1956 = vmatprep.subr.bf16.mxu0 %v1955_v47 }
 0x1f4   :  { %1958 = vmatpush3.bf16.msra.mxu0 %v1955_v47  ;;  %v742_v47 = vld [vmem:[%s2847_s10 + $0x10] sm:$0xff] }
 0x24d   :  { %v333_v5 = vpop.permute.xlu1 %332 }
 0x24e   :  { %v331_v6 = vpop.permute.xlu0 %330  ;;  %v359_v13 = vsel %vm182_vm3, %v311_v10, %v333_v5 }
 0x24f   :  { %v358_v11 = vsel %vm182_vm3, %v310_v9, %v331_v6 }
 0x251   :  { %v337_v8 = vpop.permute.xlu1 %336 }
 0x252   :  { %v335_v7 = vpop.permute.xlu0 %334  ;;  %v361_v21 = vsel %vm182_vm3, %v313_v18, %v337_v8 }
 0x253   :  { %v360_v19 = vsel %vm182_vm3, %v312_v16, %v335_v7 }
 0x256   :  { %v347_v12 = vpop.permute.xlu0 %346 }
 0x257   :  { %v349_v14 = vpop.permute.xlu1 %348  ;;  %v363_v15 = vsel %vm362_vm5, %v358_v11, %v347_v12 }
 0x258   :  { %v364_v17 = vsel %vm362_vm5, %v359_v13, %v349_v14  ;;  %1729 = vmatprep.mubr.msk.f32.mxu1 %vm386_vm6, %v363_v15 }
 0x259   :  { %1730 = vmatmul.mubr.msk.f32.vlgmr.msra.gmra.mrb[0].mxu1 %vm386_vm6, %v364_v17 }
 0x25a   :  { %v351_v20 = vpop.permute.xlu0 %350 }
 0x25b   :  { %v365_v22 = vsel %vm362_vm5, %v360_v19, %v351_v20  ;;  %v353_v23 = vpop.permute.xlu1 %352 }
 0x25c   :  { %v366_v24 = vsel %vm362_vm5, %v361_v21, %v353_v23  ;;  %1732 = vmatprep.mubr.msk.f32.mxu1 %vm386_vm6, %v365_v22 }
 0x25d   :  { %1733 = vmatmul.mubr.msk.f32.gmra.mrb[2].mxu1 %vm386_vm6, %v366_v24 }
 0x32c   :  { %v1731_v52 = vpop.f32.mrb[0].mxu1 }
 0x32d   :  { %v471_v53 = vadd.f32 %v1731_v52, %v1538_v45  ;;  %v465_v54 = vpop.f32.mrb[1].mxu1 }
 0x32e   :  { %v466_v55 = vadd.f32 %v1538_v45, %v465_v54 }
 0x32f   :  { %v485_v56 = vmax.f32 %v471_v53, 0.0  ;;  %v743_v53 = vld [vmem:[%s2847_s10 + $0x18] sm:$0xff] }
 0x330   :  { %v484_v57 = vmax.f32 %v466_v55, 0.0  ;;  %v1734_v58 = vpop.f32.mrb[2].mxu1  ;;  %v1963_v54 = vpack.c.bf16 %v743_v53, %v742_v47  ;;  %v744_v55 = vld [vmem:[%s2847_s10 + $0x20] sm:$0xff] }
 0x331   :  { %v489_v59 = vrot.slane %v485_v56, 7  ;;  %v501_v60 = vrot.slane %v485_v56, 1  ;;  %v481_v61 = vadd.f32 %v1734_v58, %v1538_v45  ;;  %518 = vrot.lane.b32.xlu1 %v485_v56, %s2071_s29  ;;  %v475_v62 = vpop.f32.mrb[3].mxu1  ;;  %v745_v56 = vld [vmem:[%s2847_s10 + $0x28] sm:$0xff]  ;;  %v746_v58 = vld [vmem:[%s2847_s10 + $0x30] sm:$0xff] }
 0x332   :  { %v488_v63 = vrot.slane %v484_v57, 7  ;;  %v500_v0 = vrot.slane %v484_v57, 1  ;;  %v476_v1 = vadd.f32 %v1538_v45, %v475_v62  ;;  %516 = vrot.lane.b32.xlu0 %v484_v57, %s2071_s29  ;;  %v741_v45 = vld [vmem:[%s2847_s10 + $0x8] sm:$0xff]  ;;  %v1967_v57 = vpack.c.bf16 %v745_v56, %v744_v55 }
 0x333   :  { %v487_v2 = vmax.f32 %v481_v61, 0.0  ;;  %v1959_v52 = vpack.c.bf16 %v741_v45, %v740_v43  ;;  %v748_v61 = vld [vmem:[%s2847_s10 + $0x40] sm:$0xff]  ;;  %v749_v62 = vld [vmem:[%s2847_s10 + $0x48] sm:$0xff] }
 0x334   :  { %v486_v3 = vmax.f32 %v476_v1, 0.0  ;;  %v506_v5 = vsel %vm116_vm0, %v500_v0, %v501_v60  ;;  %v494_v6 = vsel %vm83_vm1, %v488_v63, %v489_v59  ;;  %v751_v1 = vld [vmem:[%s2847_s10 + $0x58] sm:$0xff] }
 0x335   :  { %v491_v7 = vrot.slane %v487_v2, 7  ;;  %v503_v8 = vrot.slane %v487_v2, 1  ;;  %522 = vrot.lane.b32.xlu1 %v487_v2, %s2071_s29  ;;  %v508_v13 = vmul.f32 %v506_v5, %v2256_v41  ;;  %v497_v26 = vmul.f32 %v494_v6, %v2272_v49  ;;  %1960 = vmatprep.subr.bf16.mxu1 %v1959_v52  ;;  %v1543_v2 = vld [vmem:[%s2848_s9] ss:$0 sm:$0xff] }
 0x336   :  { %v490_v9 = vrot.slane %v486_v3, 7  ;;  %v502_v10 = vrot.slane %v486_v3, 1  ;;  %520 = vrot.lane.b32.xlu0 %v486_v3, %s2071_s29  ;;  %1962 = vmatpush3.bf16.msra.mxu1 %v1959_v52 }
 0x337   :  { %v507_v11 = vsel %vm116_vm0, %v503_v8, %v500_v0  ;;  %v495_v12 = vsel %vm83_vm1, %v491_v7, %v488_v63  ;;  %1964 = vmatprep.subr.bf16.mxu1 %v1963_v54  ;;  %v1975_v63 = vpack.c.bf16 %v749_v62, %v748_v61  ;;  %v750_v0 = vld [vmem:[%s2847_s10 + $0x50] sm:$0xff] }
 0x338   :  { %v505_v14 = vsel %vm116_vm0, %v501_v60, %v502_v10  ;;  %v504_v15 = vsel %vm116_vm0, %v502_v10, %v503_v8  ;;  %v492_v17 = vsel %vm83_vm1, %v490_v9, %v491_v7  ;;  %v493_v18 = vsel %vm83_vm1, %v489_v59, %v490_v9  ;;  %v747_v59 = vld [vmem:[%s2847_s10 + $0x38] sm:$0xff] }
 0x339   :  { %v509_v16 = vmul.f32 %v505_v14, %v2261_v44  ;;  %v510_v19 = vmul.f32 %v504_v15, %v2254_v40  ;;  %v511_v20 = vmul.f32 %v507_v11, %v2264_v46  ;;  %v496_v25 = vmul.f32 %v495_v12, %v2270_v48 }
 0x33a   :  { %532 = vrot.lane.b32.xlu0 %v508_v13, %s2072_s5  ;;  %v498_v32 = vmul.f32 %v493_v18, %v2274_v50  ;;  %v499_v34 = vmul.f32 %v492_v17, %v2276_v51  ;;  %1966 = vmatpush3.bf16.msra.mxu1 %v1963_v54  ;;  %v1971_v60 = vpack.c.bf16 %v747_v59, %v746_v58 }
 0x33b   :  { %534 = vrot.lane.b32.xlu1 %v509_v16, %s2072_s5  ;;  %1968 = vmatprep.subr.bf16.mxu1 %v1967_v57  ;;  %v1979_v3 = vpack.c.bf16 %v751_v1, %v750_v0  ;;  %v928_v1 = vld [vmem:[%s2849_s12] sm:$0xff] }
 0x33e   :  { %536 = vrot.lane.b32.xlu0 %v510_v19, %s2072_s5  ;;  %1970 = vmatpush3.bf16.msra.mxu1 %v1967_v57 }
 0x33f   :  { %538 = vrot.lane.b32.xlu1 %v511_v20, %s2072_s5  ;;  %1972 = vmatprep.subr.bf16.mxu1 %v1971_v60 }
 0x342   :  { %1974 = vmatpush3.bf16.msra.mxu1 %v1971_v60 }
 0x343   :  { %1976 = vmatprep.subr.bf16.mxu1 %v1975_v63 }
 0x346   :  { %1978 = vmatpush3.bf16.msra.mxu1 %v1975_v63 }
 0x347   :  { %1980 = vmatprep.subr.bf16.mxu1 %v1979_v3 }
 0x34a   :  { %1982 = vmatpush3.bf16.msra.mxu1 %v1979_v3  ;;  %v930_v3 = vld [vmem:[%s2849_s12 + $0x10] sm:$0xff] }
 0x3a3   :  { %v519_v21 = vpop.permute.xlu1 %518 }
 0x3a4   :  { %v517_v22 = vpop.permute.xlu0 %516  ;;  %v545_v29 = vsel %vm182_vm3, %v497_v26, %v519_v21 }
 0x3a5   :  { %v544_v27 = vsel %vm182_vm3, %v496_v25, %v517_v22 }
 0x3a7   :  { %v523_v24 = vpop.permute.xlu1 %522 }
 0x3a8   :  { %v521_v23 = vpop.permute.xlu0 %520  ;;  %v547_v37 = vsel %vm182_vm3, %v499_v34, %v523_v24 }
 0x3a9   :  { %v546_v35 = vsel %vm182_vm3, %v498_v32, %v521_v23 }
 0x3ac   :  { %v533_v28 = vpop.permute.xlu0 %532 }
 0x3ad   :  { %v548_v30 = vsel %vm362_vm5, %v544_v27, %v533_v28  ;;  %v535_v31 = vpop.permute.xlu1 %534 }
 0x3ae   :  { %v549_v33 = vsel %vm362_vm5, %v545_v29, %v535_v31  ;;  %1759 = vmatprep.mubr.msk.f32.mxu0 %vm386_vm6, %v548_v30 }
 0x3af   :  { %1760 = vmatmul.mubr.msk.f32.vlgmr.msra.gmra.mrb[4].mxu0 %vm386_vm6, %v549_v33 }
 0x3b0   :  { %v537_v36 = vpop.permute.xlu0 %536 }
 0x3b1   :  { %v550_v38 = vsel %vm362_vm5, %v546_v35, %v537_v36  ;;  %v539_v39 = vpop.permute.xlu1 %538 }
 0x3b2   :  { %v551_v42 = vsel %vm362_vm5, %v547_v37, %v539_v39  ;;  %1762 = vmatprep.mubr.msk.f32.mxu0 %vm386_vm6, %v550_v38 }
 0x3b3   :  { %1763 = vmatmul.mubr.msk.f32.gmra.mrb[6].mxu0 %vm386_vm6, %v551_v42 }
 0x482   :  { %v1761_v5 = vpop.f32.mrb[4].mxu0 }
 0x483   :  { %v655_v6 = vadd.f32 %v1761_v5, %v1543_v2  ;;  %v649_v7 = vpop.f32.mrb[5].mxu0 }
 0x484   :  { %v650_v8 = vadd.f32 %v1543_v2, %v649_v7 }
 0x485   :  { %v669_v9 = vmax.f32 %v655_v6, 0.0  ;;  %v931_v6 = vld [vmem:[%s2849_s12 + $0x18] sm:$0xff] }
 0x486   :  { %v668_v10 = vmax.f32 %v650_v8, 0.0  ;;  %v1764_v11 = vpop.f32.mrb[6].mxu0  ;;  %v1987_v7 = vpack.c.bf16 %v931_v6, %v930_v3  ;;  %v932_v8 = vld [vmem:[%s2849_s12 + $0x20] sm:$0xff] }
 0x487   :  { %v677_v12 = vrot.slane %v669_v9, 7  ;;  %v689_v13 = vrot.slane %v669_v9, 1  ;;  %v665_v14 = vadd.f32 %v1764_v11, %v1543_v2  ;;  %706 = vrot.lane.b32.xlu1 %v669_v9, %s2071_s29  ;;  %v659_v15 = vpop.f32.mrb[7].mxu0  ;;  %v933_v9 = vld [vmem:[%s2849_s12 + $0x28] sm:$0xff]  ;;  %v934_v11 = vld [vmem:[%s2849_s12 + $0x30] sm:$0xff] }
 0x488   :  { %v676_v16 = vrot.slane %v668_v10, 7  ;;  %v688_v17 = vrot.slane %v668_v10, 1  ;;  %v660_v18 = vadd.f32 %v1543_v2, %v659_v15  ;;  %704 = vrot.lane.b32.xlu0 %v668_v10, %s2071_s29  ;;  %v929_v2 = vld [vmem:[%s2849_s12 + $0x8] sm:$0xff]  ;;  %v1991_v10 = vpack.c.bf16 %v933_v9, %v932_v8 }
 0x489   :  { %v671_v19 = vmax.f32 %v665_v14, 0.0  ;;  %v1983_v5 = vpack.c.bf16 %v929_v2, %v928_v1  ;;  %v936_v14 = vld [vmem:[%s2849_s12 + $0x40] sm:$0xff]  ;;  %v937_v15 = vld [vmem:[%s2849_s12 + $0x48] sm:$0xff] }
 0x48a   :  { %v670_v20 = vmax.f32 %v660_v18, 0.0  ;;  %v694_v21 = vsel %vm116_vm0, %v688_v17, %v689_v13  ;;  %v682_v22 = vsel %vm83_vm1, %v676_v16, %v677_v12  ;;  %v938_v18 = vld [vmem:[%s2849_s12 + $0x50] sm:$0xff] }
 0x48b   :  { %v679_v23 = vrot.slane %v671_v19, 7  ;;  %v691_v24 = vrot.slane %v671_v19, 1  ;;  %710 = vrot.lane.b32.xlu1 %v671_v19, %s2071_s29  ;;  %v696_v29 = vmul.f32 %v694_v21, %v2256_v41  ;;  %v685_v45 = vmul.f32 %v682_v22, %v2272_v49  ;;  %1984 = vmatprep.subr.bf16.mxu0 %v1983_v5  ;;  %v939_v19 = vld [vmem:[%s2849_s12 + $0x58] sm:$0xff] }
 0x48c   :  { %v678_v25 = vrot.slane %v670_v20, 7  ;;  %v690_v26 = vrot.slane %v670_v20, 1  ;;  %708 = vrot.lane.b32.xlu0 %v670_v20, %s2071_s29  ;;  %1986 = vmatpush3.bf16.msra.mxu0 %v1983_v5  ;;  %v673_v20 = vld [vmem:[%s2851_s1 + $0x8] sm:$0xff]  ;;  %v2003_v22 = vpack.c.bf16 %v939_v19, %v938_v18 }
 0x48d   :  { %v695_v27 = vsel %vm116_vm0, %v691_v24, %v688_v17  ;;  %v683_v28 = vsel %vm83_vm1, %v679_v23, %v676_v16  ;;  %1988 = vmatprep.subr.bf16.mxu0 %v1987_v7  ;;  %v1999_v16 = vpack.c.bf16 %v937_v15, %v936_v14  ;;  %v1548_v17 = vld [vmem:[%s2850_s11] ss:$0 sm:$0xff] }
 0x48e   :  { %v693_v30 = vsel %vm116_vm0, %v689_v13, %v690_v26  ;;  %v692_v31 = vsel %vm116_vm0, %v690_v26, %v691_v24  ;;  %v680_v33 = vsel %vm83_vm1, %v678_v25, %v679_v23  ;;  %v681_v34 = vsel %vm83_vm1, %v677_v12, %v678_v25  ;;  %v935_v12 = vld [vmem:[%s2849_s12 + $0x38] sm:$0xff]  ;;  %v672_v24 = vld [vmem:[%s2851_s1] sm:$0xff] }
 0x48f   :  { %v697_v32 = vmul.f32 %v693_v30, %v2261_v44  ;;  %v698_v35 = vmul.f32 %v692_v31, %v2254_v40  ;;  %v699_v36 = vmul.f32 %v695_v27, %v2264_v46  ;;  %v684_v43 = vmul.f32 %v683_v28, %v2270_v48 }
 0x490   :  { %720 = vrot.lane.b32.xlu0 %v696_v29, %s2072_s5  ;;  %v686_v56 = vmul.f32 %v681_v34, %v2274_v50  ;;  %v687_v58 = vmul.f32 %v680_v33, %v2276_v51  ;;  %1990 = vmatpush3.bf16.msra.mxu0 %v1987_v7  ;;  %v1995_v13 = vpack.c.bf16 %v935_v12, %v934_v11  ;;  %v675_v29 = vld [vmem:[%s2851_s1 + $0x18] sm:$0xff]  ;;  %v674_v33 = vld [vmem:[%s2851_s1 + $0x10] sm:$0xff] }
 0x491   :  { %722 = vrot.lane.b32.xlu1 %v697_v32, %s2072_s5  ;;  %1992 = vmatprep.subr.bf16.mxu0 %v1991_v10 }
 0x494   :  { %724 = vrot.lane.b32.xlu0 %v698_v35, %s2072_s5  ;;  %1994 = vmatpush3.bf16.msra.mxu0 %v1991_v10 }
 0x495   :  { %726 = vrot.lane.b32.xlu1 %v699_v36, %s2072_s5  ;;  %1996 = vmatprep.subr.bf16.mxu0 %v1995_v13 }
 0x498   :  { %1998 = vmatpush3.bf16.msra.mxu0 %v1995_v13 }
 0x499   :  { %2000 = vmatprep.subr.bf16.mxu0 %v1999_v16 }
 0x49c   :  { %2002 = vmatpush3.bf16.msra.mxu0 %v1999_v16 }
 0x49d   :  { %2004 = vmatprep.subr.bf16.mxu0 %v2003_v22 }
 0x4a0   :  { %2006 = vmatpush3.bf16.msra.mxu0 %v2003_v22 }
 0x4f9   :  { %v707_v37 = vpop.permute.xlu1 %706 }
 0x4fa   :  { %v705_v38 = vpop.permute.xlu0 %704  ;;  %v733_v53 = vsel %vm182_vm3, %v685_v45, %v707_v37 }
 0x4fb   :  { %v732_v47 = vsel %vm182_vm3, %v684_v43, %v705_v38 }
 0x4fd   :  { %v711_v42 = vpop.permute.xlu1 %710 }
 0x4fe   :  { %v709_v39 = vpop.permute.xlu0 %708  ;;  %v735_v61 = vsel %vm182_vm3, %v687_v58, %v711_v42 }
 0x4ff   :  { %v734_v59 = vsel %vm182_vm3, %v686_v56, %v709_v39 }
 0x502   :  { %v721_v52 = vpop.permute.xlu0 %720 }
 0x503   :  { %v736_v54 = vsel %vm362_vm5, %v732_v47, %v721_v52  ;;  %v723_v55 = vpop.permute.xlu1 %722 }
 0x504   :  { %v737_v57 = vsel %vm362_vm5, %v733_v53, %v723_v55  ;;  %1789 = vmatprep.mubr.msk.f32.mxu1 %vm386_vm6, %v736_v54 }
 0x505   :  { %1790 = vmatmul.mubr.msk.f32.vlgmr.msra.gmra.mrb[4].mxu1 %vm386_vm6, %v737_v57 }
 0x506   :  { %v725_v60 = vpop.permute.xlu0 %724 }
 0x507   :  { %v738_v62 = vsel %vm362_vm5, %v734_v59, %v725_v60  ;;  %v727_v63 = vpop.permute.xlu1 %726 }
 0x508   :  { %v739_v0 = vsel %vm362_vm5, %v735_v61, %v727_v63  ;;  %1792 = vmatprep.mubr.msk.f32.mxu1 %vm386_vm6, %v738_v62 }
 0x509   :  { %1793 = vmatmul.mubr.msk.f32.gmra.mrb[6].mxu1 %vm386_vm6, %v739_v0 }
 0x5d8   :  { %v1791_v21 = vpop.f32.mrb[4].mxu1 }
 0x5d9   :  { %v843_v23 = vadd.f32 %v1791_v21, %v1548_v17  ;;  %v837_v25 = vpop.f32.mrb[5].mxu1 }
 0x5da   :  { %v838_v26 = vadd.f32 %v1548_v17, %v837_v25 }
 0x5db   :  { %v857_v27 = vadd.f32 %v843_v23, %v673_v20 }
 0x5dc   :  { %v856_v28 = vadd.f32 %v838_v26, %v672_v24  ;;  %v1794_v30 = vpop.f32.mrb[6].mxu1  ;;  %v1112_v26 = vld [vmem:[%s2852_s14] sm:$0xff] }
 0x5dd   :  { %v861_v31 = vmax.f32 %v857_v27, 0.0  ;;  %v853_v32 = vadd.f32 %v1794_v30, %v1548_v17  ;;  %v847_v34 = vpop.f32.mrb[7].mxu1  ;;  %v1113_v27 = vld [vmem:[%s2852_s14 + $0x8] sm:$0xff]  ;;  %v1115_v30 = vld [vmem:[%s2852_s14 + $0x18] sm:$0xff] }
 0x5de   :  { %v860_v35 = vmax.f32 %v856_v28, 0.0  ;;  %v848_v36 = vadd.f32 %v1548_v17, %v847_v34  ;;  %v1114_v28 = vld [vmem:[%s2852_s14 + $0x10] sm:$0xff] }
 0x5df   :  { %v865_v37 = vrot.slane %v861_v31, 7  ;;  %v877_v38 = vrot.slane %v861_v31, 1  ;;  %v859_v39 = vadd.f32 %v853_v32, %v675_v29  ;;  %894 = vrot.lane.b32.xlu1 %v861_v31, %s2071_s29  ;;  %v2007_v29 = vpack.c.bf16 %v1113_v27, %v1112_v26  ;;  %v1116_v32 = vld [vmem:[%s2852_s14 + $0x20] sm:$0xff] }
 0x5e0   :  { %v864_v42 = vrot.slane %v860_v35, 7  ;;  %v876_v43 = vrot.slane %v860_v35, 1  ;;  %v858_v45 = vadd.f32 %v848_v36, %v674_v33  ;;  %892 = vrot.lane.b32.xlu0 %v860_v35, %s2071_s29  ;;  %v2011_v31 = vpack.c.bf16 %v1115_v30, %v1114_v28  ;;  %v1117_v33 = vld [vmem:[%s2852_s14 + $0x28] sm:$0xff]  ;;  %v1118_v35 = vld [vmem:[%s2852_s14 + $0x30] sm:$0xff]  ;;  %v1119_v36 = vld [vmem:[%s2852_s14 + $0x38] sm:$0xff] }
 0x5e1   :  { %v863_v47 = vmax.f32 %v859_v39, 0.0  ;;  %2008 = vmatprep.subr.bf16.mxu1 %v2007_v29  ;;  %v2015_v34 = vpack.c.bf16 %v1117_v33, %v1116_v32  ;;  %v1121_v39 = vld [vmem:[%s2852_s14 + $0x48] sm:$0xff] }
 0x5e2   :  { %v862_v52 = vmax.f32 %v858_v45, 0.0  ;;  %v882_v53 = vsel %vm116_vm0, %v876_v43, %v877_v38  ;;  %v870_v54 = vsel %vm83_vm1, %v864_v42, %v865_v37  ;;  %2010 = vmatpush3.bf16.msra.mxu1 %v2007_v29  ;;  %v1123_v45 = vld [vmem:[%s2852_s14 + $0x58] sm:$0xff] }
 0x5e3   :  { %v867_v55 = vrot.slane %v863_v47, 7  ;;  %v879_v56 = vrot.slane %v863_v47, 1  ;;  %898 = vrot.lane.b32.xlu1 %v863_v47, %s2071_s29  ;;  %v884_v61 = vmul.f32 %v882_v53, %v2256_v41  ;;  %v873_v11 = vmul.f32 %v870_v54, %v2272_v49  ;;  %2012 = vmatprep.subr.bf16.mxu1 %v2011_v31  ;;  %v1553_v47 = vld [vmem:[%s2853_s13] ss:$0 sm:$0xff] }
 0x5e4   :  { %v866_v57 = vrot.slane %v862_v52, 7  ;;  %v878_v58 = vrot.slane %v862_v52, 1  ;;  %896 = vrot.lane.b32.xlu0 %v862_v52, %s2071_s29 }
 0x5e5   :  { %v883_v59 = vsel %vm116_vm0, %v879_v56, %v876_v43  ;;  %v871_v60 = vsel %vm83_vm1, %v867_v55, %v864_v42  ;;  %v1122_v43 = vld [vmem:[%s2852_s14 + $0x50] sm:$0xff] }
 0x5e6   :  { %v881_v62 = vsel %vm116_vm0, %v877_v38, %v878_v58  ;;  %v880_v63 = vsel %vm116_vm0, %v878_v58, %v879_v56  ;;  %v868_v1 = vsel %vm83_vm1, %v866_v57, %v867_v55  ;;  %v869_v2 = vsel %vm83_vm1, %v865_v37, %v866_v57  ;;  %2014 = vmatpush3.bf16.msra.mxu1 %v2011_v31  ;;  %v1120_v38 = vld [vmem:[%s2852_s14 + $0x40] sm:$0xff] }
 0x5e7   :  { %v885_v0 = vmul.f32 %v881_v62, %v2261_v44  ;;  %v886_v3 = vmul.f32 %v880_v63, %v2254_v40  ;;  %v887_v5 = vmul.f32 %v883_v59, %v2264_v46  ;;  %v872_v10 = vmul.f32 %v871_v60, %v2270_v48  ;;  %2016 = vmatprep.subr.bf16.mxu1 %v2015_v34 }
 0x5e8   :  { %908 = vrot.lane.b32.xlu0 %v884_v61, %s2072_s5  ;;  %v874_v17 = vmul.f32 %v869_v2, %v2274_v50  ;;  %v875_v19 = vmul.f32 %v868_v1, %v2276_v51  ;;  %v2019_v37 = vpack.c.bf16 %v1119_v36, %v1118_v35  ;;  %v2023_v42 = vpack.c.bf16 %v1121_v39, %v1120_v38 }
 0x5e9   :  { %910 = vrot.lane.b32.xlu1 %v885_v0, %s2072_s5  ;;  %v2027_v52 = vpack.c.bf16 %v1123_v45, %v1122_v43  ;;  %v1296_v45 = vld [vmem:[%s2854_s16] sm:$0xff] }
 0x5ea   :  { %2018 = vmatpush3.bf16.msra.mxu1 %v2015_v34 }
 0x5eb   :  { %2020 = vmatprep.subr.bf16.mxu1 %v2019_v37 }
 0x5ec   :  { %912 = vrot.lane.b32.xlu0 %v886_v3, %s2072_s5 }
 0x5ed   :  { %914 = vrot.lane.b32.xlu1 %v887_v5, %s2072_s5 }
 0x5ee   :  { %2022 = vmatpush3.bf16.msra.mxu1 %v2019_v37 }
 0x5ef   :  { %2024 = vmatprep.subr.bf16.mxu1 %v2023_v42 }
 0x5f2   :  { %2026 = vmatpush3.bf16.msra.mxu1 %v2023_v42 }
 0x5f3   :  { %2028 = vmatprep.subr.bf16.mxu1 %v2027_v52 }
 0x5f6   :  { %2030 = vmatpush3.bf16.msra.mxu1 %v2027_v52  ;;  %v1298_v52 = vld [vmem:[%s2854_s16 + $0x10] sm:$0xff] }
 0x651   :  { %v895_v6 = vpop.permute.xlu1 %894 }
 0x652   :  { %v893_v7 = vpop.permute.xlu0 %892  ;;  %v921_v14 = vsel %vm182_vm3, %v873_v11, %v895_v6 }
 0x653   :  { %v920_v12 = vsel %vm182_vm3, %v872_v10, %v893_v7 }
 0x655   :  { %v899_v9 = vpop.permute.xlu1 %898 }
 0x656   :  { %v897_v8 = vpop.permute.xlu0 %896  ;;  %v923_v22 = vsel %vm182_vm3, %v875_v19, %v899_v9 }
 0x657   :  { %v922_v20 = vsel %vm182_vm3, %v874_v17, %v897_v8 }
 0x65a   :  { %v909_v13 = vpop.permute.xlu0 %908 }
 0x65b   :  { %v924_v15 = vsel %vm362_vm5, %v920_v12, %v909_v13  ;;  %v911_v16 = vpop.permute.xlu1 %910 }
 0x65c   :  { %v925_v18 = vsel %vm362_vm5, %v921_v14, %v911_v16  ;;  %1819 = vmatprep.mubr.msk.f32.mxu0 %vm386_vm6, %v924_v15 }
 0x65d   :  { %1820 = vmatmul.mubr.msk.f32.vlgmr.msra.gmra.mrb[8].mxu0 %vm386_vm6, %v925_v18 }
 0x65e   :  { %v913_v21 = vpop.permute.xlu0 %912 }
 0x65f   :  { %v926_v23 = vsel %vm362_vm5, %v922_v20, %v913_v21  ;;  %v915_v24 = vpop.permute.xlu1 %914 }
 0x660   :  { %v927_v25 = vsel %vm362_vm5, %v923_v22, %v915_v24  ;;  %1822 = vmatprep.mubr.msk.f32.mxu0 %vm386_vm6, %v926_v23 }
 0x661   :  { %1823 = vmatmul.mubr.msk.f32.gmra.mrb[10].mxu0 %vm386_vm6, %v927_v25 }
 0x730   :  { %v1821_v53 = vpop.f32.mrb[8].mxu0 }
 0x731   :  { %v1031_v54 = vadd.f32 %v1821_v53, %v1553_v47  ;;  %v1025_v55 = vpop.f32.mrb[9].mxu0 }
 0x732   :  { %v1026_v56 = vadd.f32 %v1553_v47, %v1025_v55 }
 0x733   :  { %v1045_v57 = vmax.f32 %v1031_v54, 0.0  ;;  %v1299_v54 = vld [vmem:[%s2854_s16 + $0x18] sm:$0xff] }
 0x734   :  { %v1044_v58 = vmax.f32 %v1026_v56, 0.0  ;;  %v1824_v59 = vpop.f32.mrb[10].mxu0  ;;  %v2035_v55 = vpack.c.bf16 %v1299_v54, %v1298_v52  ;;  %v1300_v56 = vld [vmem:[%s2854_s16 + $0x20] sm:$0xff] }
 0x735   :  { %v1049_v60 = vrot.slane %v1045_v57, 7  ;;  %v1061_v61 = vrot.slane %v1045_v57, 1  ;;  %v1041_v62 = vadd.f32 %v1824_v59, %v1553_v47  ;;  %1078 = vrot.lane.b32.xlu1 %v1045_v57, %s2071_s29  ;;  %v1035_v63 = vpop.f32.mrb[11].mxu0  ;;  %v1301_v57 = vld [vmem:[%s2854_s16 + $0x28] sm:$0xff]  ;;  %v1302_v59 = vld [vmem:[%s2854_s16 + $0x30] sm:$0xff] }
 0x736   :  { %v1048_v0 = vrot.slane %v1044_v58, 7  ;;  %v1060_v1 = vrot.slane %v1044_v58, 1  ;;  %v1036_v2 = vadd.f32 %v1553_v47, %v1035_v63  ;;  %1076 = vrot.lane.b32.xlu0 %v1044_v58, %s2071_s29  ;;  %v1297_v47 = vld [vmem:[%s2854_s16 + $0x8] sm:$0xff]  ;;  %v2039_v58 = vpack.c.bf16 %v1301_v57, %v1300_v56 }
 0x737   :  { %v1047_v3 = vmax.f32 %v1041_v62, 0.0  ;;  %v2031_v53 = vpack.c.bf16 %v1297_v47, %v1296_v45  ;;  %v1304_v62 = vld [vmem:[%s2854_s16 + $0x40] sm:$0xff]  ;;  %v1305_v63 = vld [vmem:[%s2854_s16 + $0x48] sm:$0xff] }
 0x738   :  { %v1046_v5 = vmax.f32 %v1036_v2, 0.0  ;;  %v1066_v6 = vsel %vm116_vm0, %v1060_v1, %v1061_v61  ;;  %v1054_v7 = vsel %vm83_vm1, %v1048_v0, %v1049_v60  ;;  %v1307_v2 = vld [vmem:[%s2854_s16 + $0x58] sm:$0xff] }
 0x739   :  { %v1051_v8 = vrot.slane %v1047_v3, 7  ;;  %v1063_v9 = vrot.slane %v1047_v3, 1  ;;  %1082 = vrot.lane.b32.xlu1 %v1047_v3, %s2071_s29  ;;  %v1068_v14 = vmul.f32 %v1066_v6, %v2256_v41  ;;  %v1057_v27 = vmul.f32 %v1054_v7, %v2272_v49  ;;  %2032 = vmatprep.subr.bf16.mxu0 %v2031_v53  ;;  %v1558_v3 = vld [vmem:[%s2855_s15] ss:$0 sm:$0xff] }
 0x73a   :  { %v1050_v10 = vrot.slane %v1046_v5, 7  ;;  %v1062_v11 = vrot.slane %v1046_v5, 1  ;;  %1080 = vrot.lane.b32.xlu0 %v1046_v5, %s2071_s29  ;;  %2034 = vmatpush3.bf16.msra.mxu0 %v2031_v53 }
 0x73b   :  { %v1067_v12 = vsel %vm116_vm0, %v1063_v9, %v1060_v1  ;;  %v1055_v13 = vsel %vm83_vm1, %v1051_v8, %v1048_v0  ;;  %2036 = vmatprep.subr.bf16.mxu0 %v2035_v55  ;;  %v2047_v0 = vpack.c.bf16 %v1305_v63, %v1304_v62  ;;  %v1306_v1 = vld [vmem:[%s2854_s16 + $0x50] sm:$0xff]  ;;  %v1563_v63 = vld [vmem:[%s2857_s17] ss:$0 sm:$0xff] }
 0x73c   :  { %v1065_v15 = vsel %vm116_vm0, %v1061_v61, %v1062_v11  ;;  %v1064_v16 = vsel %vm116_vm0, %v1062_v11, %v1063_v9  ;;  %v1052_v18 = vsel %vm83_vm1, %v1050_v10, %v1051_v8  ;;  %v1053_v19 = vsel %vm83_vm1, %v1049_v60, %v1050_v10  ;;  %v1303_v60 = vld [vmem:[%s2854_s16 + $0x38] sm:$0xff] }
 0x73d   :  { %v1069_v17 = vmul.f32 %v1065_v15, %v2261_v44  ;;  %v1070_v20 = vmul.f32 %v1064_v16, %v2254_v40  ;;  %v1071_v21 = vmul.f32 %v1067_v12, %v2264_v46  ;;  %v1056_v26 = vmul.f32 %v1055_v13, %v2270_v48 }
 0x73e   :  { %1092 = vrot.lane.b32.xlu0 %v1068_v14, %s2072_s5  ;;  %v1058_v33 = vmul.f32 %v1053_v19, %v2274_v50  ;;  %v1059_v35 = vmul.f32 %v1052_v18, %v2276_v51  ;;  %2038 = vmatpush3.bf16.msra.mxu0 %v2035_v55  ;;  %v2043_v61 = vpack.c.bf16 %v1303_v60, %v1302_v59 }
 0x73f   :  { %1094 = vrot.lane.b32.xlu1 %v1069_v17, %s2072_s5  ;;  %2040 = vmatprep.subr.bf16.mxu0 %v2039_v58  ;;  %v2051_v5 = vpack.c.bf16 %v1307_v2, %v1306_v1 }
 0x742   :  { %1096 = vrot.lane.b32.xlu0 %v1070_v20, %s2072_s5  ;;  %2042 = vmatpush3.bf16.msra.mxu0 %v2039_v58 }
 0x743   :  { %1098 = vrot.lane.b32.xlu1 %v1071_v21, %s2072_s5  ;;  %2044 = vmatprep.subr.bf16.mxu0 %v2043_v61 }
 0x746   :  { %2046 = vmatpush3.bf16.msra.mxu0 %v2043_v61 }
 0x747   :  { %2048 = vmatprep.subr.bf16.mxu0 %v2047_v0 }
 0x74a   :  { %2050 = vmatpush3.bf16.msra.mxu0 %v2047_v0 }
 0x74b   :  { %2052 = vmatprep.subr.bf16.mxu0 %v2051_v5 }
 0x74e   :  { %2054 = vmatpush3.bf16.msra.mxu0 %v2051_v5 }
 0x7a7   :  { %v1079_v22 = vpop.permute.xlu1 %1078 }
 0x7a8   :  { %v1077_v23 = vpop.permute.xlu0 %1076  ;;  %v1105_v30 = vsel %vm182_vm3, %v1057_v27, %v1079_v22 }
 0x7a9   :  { %v1104_v28 = vsel %vm182_vm3, %v1056_v26, %v1077_v23 }
 0x7ab   :  { %v1083_v25 = vpop.permute.xlu1 %1082 }
 0x7ac   :  { %v1081_v24 = vpop.permute.xlu0 %1080  ;;  %v1107_v38 = vsel %vm182_vm3, %v1059_v35, %v1083_v25  ;;  %v1417_v25 = vld [vmem:[%s2856_s18 + $0x8] sm:$0xff] }
 0x7ad   :  { %v1106_v36 = vsel %vm182_vm3, %v1058_v33, %v1081_v24  ;;  %v1416_v24 = vld [vmem:[%s2856_s18] sm:$0xff] }
 0x7b0   :  { %v1093_v29 = vpop.permute.xlu0 %1092 }
 0x7b1   :  { %v1108_v31 = vsel %vm362_vm5, %v1104_v28, %v1093_v29  ;;  %v1095_v32 = vpop.permute.xlu1 %1094 }
 0x7b2   :  { %v1109_v34 = vsel %vm362_vm5, %v1105_v30, %v1095_v32  ;;  %1849 = vmatprep.mubr.msk.f32.mxu1 %vm386_vm6, %v1108_v31  ;;  %v2055_v30 = vpack.c.bf16 %v1417_v25, %v1416_v24 }
 0x7b3   :  { %1850 = vmatmul.mubr.msk.f32.vlgmr.msra.gmra.mrb[8].mxu1 %vm386_vm6, %v1109_v34 }
 0x7b4   :  { %v1097_v37 = vpop.permute.xlu0 %1096  ;;  %2056 = vmatprep.subr.bf16.mxu1 %v2055_v30 }
 0x7b5   :  { %v1110_v39 = vsel %vm362_vm5, %v1106_v36, %v1097_v37  ;;  %v1099_v42 = vpop.permute.xlu1 %1098  ;;  %2058 = vmatpush3.bf16.msra.mxu1 %v2055_v30 }
 0x7b6   :  { %v1111_v43 = vsel %vm362_vm5, %v1107_v38, %v1099_v42  ;;  %1852 = vmatprep.mubr.msk.f32.mxu1 %vm386_vm6, %v1110_v39 }
 0x7b7   :  { %1853 = vmatmul.mubr.msk.f32.gmra.mrb[10].mxu1 %vm386_vm6, %v1111_v43 }
 0x886   :  { %v1851_v6 = vpop.f32.mrb[8].mxu1 }
 0x887   :  { %v1215_v7 = vadd.f32 %v1851_v6, %v1558_v3  ;;  %v1209_v8 = vpop.f32.mrb[9].mxu1 }
 0x888   :  { %v1210_v9 = vadd.f32 %v1558_v3, %v1209_v8 }
 0x889   :  { %v1229_v10 = vmax.f32 %v1215_v7, 0.0 }
 0x88a   :  { %v1228_v11 = vmax.f32 %v1210_v9, 0.0  ;;  %v1854_v12 = vpop.f32.mrb[10].mxu1 }
 0x88b   :  { %v1233_v13 = vrot.slane %v1229_v10, 7  ;;  %v1245_v14 = vrot.slane %v1229_v10, 1  ;;  %v1225_v15 = vadd.f32 %v1854_v12, %v1558_v3  ;;  %1262 = vrot.lane.b32.xlu1 %v1229_v10, %s2071_s29  ;;  %v1219_v16 = vpop.f32.mrb[11].mxu1 }
 0x88c   :  { %v1232_v17 = vrot.slane %v1228_v11, 7  ;;  %v1244_v18 = vrot.slane %v1228_v11, 1  ;;  %v1220_v19 = vadd.f32 %v1558_v3, %v1219_v16  ;;  %1260 = vrot.lane.b32.xlu0 %v1228_v11, %s2071_s29 }
 0x88d   :  { %v1231_v20 = vmax.f32 %v1225_v15, 0.0 }
 0x88e   :  { %v1230_v21 = vmax.f32 %v1220_v19, 0.0  ;;  %v1250_v22 = vsel %vm116_vm0, %v1244_v18, %v1245_v14  ;;  %v1238_v23 = vsel %vm83_vm1, %v1232_v17, %v1233_v13 }
 0x88f   :  { %v1235_v26 = vrot.slane %v1231_v20, 7  ;;  %v1247_v27 = vrot.slane %v1231_v20, 1  ;;  %1266 = vrot.lane.b32.xlu1 %v1231_v20, %s2071_s29  ;;  %v1252_v33 = vmul.f32 %v1250_v22, %v2256_v41  ;;  %v1241_v47 = vmul.f32 %v1238_v23, %v2272_v49 }
 0x890   :  { %v1234_v28 = vrot.slane %v1230_v21, 7  ;;  %v1246_v29 = vrot.slane %v1230_v21, 1  ;;  %1264 = vrot.lane.b32.xlu0 %v1230_v21, %s2071_s29 }
 0x891   :  { %v1251_v31 = vsel %vm116_vm0, %v1247_v27, %v1244_v18  ;;  %v1239_v32 = vsel %vm83_vm1, %v1235_v26, %v1232_v17 }
 0x892   :  { %v1249_v34 = vsel %vm116_vm0, %v1245_v14, %v1246_v29  ;;  %v1248_v35 = vsel %vm116_vm0, %v1246_v29, %v1247_v27  ;;  %v1236_v37 = vsel %vm83_vm1, %v1234_v28, %v1235_v26  ;;  %v1237_v38 = vsel %vm83_vm1, %v1233_v13, %v1234_v28  ;;  %v1568_v13 = vld [vmem:[%s2858_s19] ss:$0 sm:$0xff] }
 0x893   :  { %v1253_v36 = vmul.f32 %v1249_v34, %v2261_v44  ;;  %v1254_v41 = vmul.f32 %v1248_v35, %v2254_v40  ;;  %v1255_v39 = vmul.f32 %v1251_v31, %v2264_v46  ;;  %v1240_v4 = vmul.f32 %v1239_v32, %v2270_v48 }
 0x894   :  { %1276 = vrot.lane.b32.xlu0 %v1252_v33, %s2072_s5  ;;  %v1242_v55 = vmul.f32 %v1237_v38, %v2274_v50  ;;  %v1243_v57 = vmul.f32 %v1236_v37, %v2276_v51  ;;  %v1418_v50 = vld [vmem:[%s2856_s18 + $0x10] sm:$0xff]  ;;  %v1419_v51 = vld [vmem:[%s2856_s18 + $0x18] sm:$0xff] }
 0x895   :  { %1278 = vrot.lane.b32.xlu1 %v1253_v36, %s2072_s5  ;;  %v2059_v62 = vpack.c.bf16 %v1419_v51, %v1418_v50 }
 0x897   :  { %2060 = vmatprep.subr.bf16.mxu1 %v2059_v62 }
 0x898   :  { %1280 = vrot.lane.b32.xlu0 %v1254_v41, %s2072_s5  ;;  %2062 = vmatpush3.bf16.msra.mxu1 %v2059_v62 }
 0x899   :  { %1282 = vrot.lane.b32.xlu1 %v1255_v39, %s2072_s5 }
 0x8fd   :  { %v1263_v44 = vpop.permute.xlu1 %1262 }
 0x8fe   :  { %v1261_v42 = vpop.permute.xlu0 %1260  ;;  %v1289_v54 = vsel %vm182_vm3, %v1241_v47, %v1263_v44 }
 0x8ff   :  { %v1288_v52 = vsel %vm182_vm3, %v1240_v4, %v1261_v42 }
 0x901   :  { %v1267_v45 = vpop.permute.xlu1 %1266 }
 0x902   :  { %v1265_v43 = vpop.permute.xlu0 %1264  ;;  %v1291_v58 = vsel %vm182_vm3, %v1243_v57, %v1267_v45 }
 0x903   :  { %v1290_v48 = vsel %vm182_vm3, %v1242_v55, %v1265_v43 }
 0x906   :  { %v1277_v53 = vpop.permute.xlu0 %1276 }
 0x907   :  { %v1292_v40 = vsel %vm362_vm5, %v1288_v52, %v1277_v53  ;;  %v1279_v46 = vpop.permute.xlu1 %1278 }
 0x908   :  { %v1293_v56 = vsel %vm362_vm5, %v1289_v54, %v1279_v46  ;;  %1879 = vmatprep.mubr.msk.f32.mxu0 %vm386_vm6, %v1292_v40 }
 0x909   :  { %1880 = vmatmul.mubr.msk.f32.vlgmr.msra.gmra.mrb[12].mxu0 %vm386_vm6, %v1293_v56 }
 0x90a   :  { %v1281_v49 = vpop.permute.xlu0 %1280 }
 0x90b   :  { %v1294_v59 = vsel %vm362_vm5, %v1290_v48, %v1281_v49  ;;  %v1283_v60 = vpop.permute.xlu1 %1282 }
 0x90c   :  { %v1295_v61 = vsel %vm362_vm5, %v1291_v58, %v1283_v60  ;;  %1882 = vmatprep.mubr.msk.f32.mxu0 %vm386_vm6, %v1294_v59 }
 0x90d   :  { %1883 = vmatmul.mubr.msk.f32.gmra.mrb[14].mxu0 %vm386_vm6, %v1295_v61 }
 0x9dc   :  { %v1881_v0 = vpop.f32.mrb[12].mxu0 }
 0x9dd   :  { %v1399_v1 = vadd.f32 %v1881_v0, %v1563_v63  ;;  %v1393_v2 = vpop.f32.mrb[13].mxu0 }
 0x9de   :  { %v1394_v3 = vadd.f32 %v1563_v63, %v1393_v2 }
 0x9df   :  { %v1413_v7 = vmax.f32 %v1399_v1, 0.0 }
 0x9e0   :  { %v1412_v5 = vmax.f32 %v1394_v3, 0.0  ;;  %v1884_v6 = vpop.f32.mrb[14].mxu0 }
 0x9e1   :  { %v1409_v8 = vadd.f32 %v1884_v6, %v1563_v63  ;;  %v1403_v9 = vpop.f32.mrb[15].mxu0 }
 0x9e2   :  { %v1404_v10 = vadd.f32 %v1563_v63, %v1403_v9  ;;  %1893 = vmatprep.mubr.msk.f32.mxu1 %vm182_vm3, %v1412_v5 }
 0x9e3   :  { %1894 = vmatmul.mubr.msk.f32.vlgmr.msra.gmra.mrb[12].mxu1 %vm182_vm3, %v1413_v7  ;;  %v1415_v12 = vmax.f32 %v1409_v8, 0.0 }
 0x9e4   :  { %v1414_v11 = vmax.f32 %v1404_v10, 0.0 }
 0x9e6   :  { %1896 = vmatprep.mubr.msk.f32.mxu1 %vm182_vm3, %v1414_v11 }
 0x9e7   :  { %1897 = vmatmul.mubr.msk.f32.gmra.mrb[14].mxu1 %vm182_vm3, %v1415_v12 }
 0xab6   :  { %v1895_v14 = vpop.f32.mrb[12].mxu1 }
 0xab7   :  { %v1511_v15 = vadd.f32 %v1895_v14, %v1568_v13  ;;  %v1505_v16 = vpop.f32.mrb[13].mxu1 }
 0xab8   :  { %v1506_v17 = vadd.f32 %v1568_v13, %v1505_v16 }
 0xab9   :  { %1526 = vst.msk [vmem:[%s2859_s20 + $0x8] sm:$0xff] %vm1524_vm7, %v1511_v15 }
 0xaba   :  { %1525 = vst.msk [vmem:[%s2859_s20] sm:$0xff] %vm1524_vm7, %v1506_v17  ;;  %v1898_v18 = vpop.f32.mrb[14].mxu1 }
 0xabb   :  { %v1521_v19 = vadd.f32 %v1898_v18, %v1568_v13  ;;  %v1515_v20 = vpop.f32.mrb[15].mxu1 }
 0xabc   :  { %v1516_v21 = vadd.f32 %v1568_v13, %v1515_v20 }
 0xabd   :  { %1528 = vst.msk [vmem:[%s2859_s20 + $0x18] sm:$0xff] %vm1524_vm7, %v1521_v19 }
 0xabe   :  { %1527 = vst.msk [vmem:[%s2859_s20 + $0x10] sm:$0xff] %vm1524_vm7, %v1516_v21 }

</bundles_post_ra>
